<compile_context>
chip_gen: v5e
topology: v5e:2x2
jax: 0.10.0
libtpu: 0.0.40
codegen_flags: <defaults>
</compile_context>

<pallas_src>
import functools

import jax
import jax.numpy as jnp
from jax import lax
from jax.experimental import pallas as pl
from jax.experimental.pallas import tpu as pltpu


# ---------------------------------------------------------------------------
# Kernel: implicit-GEMM conv  ->  + bias  (+ residual)  -> ReLU
# ---------------------------------------------------------------------------
def _fused_conv_kernel(*refs, src_offsets, has_res, relu):
    """out = relu?( sum_taps shift(src) @ W_tap + bias [+ residual] ).

    refs = (src_0, ..., src_{S-1}, [res], w, bias, out)
      src_i : (1, L_i, C_i) bf16 — spatially padded NHWC map flattened to rows
      w     : (sum_i n_taps_i * C_i, Cout) bf16 — BN scale already folded in
      bias  : (1, Cout) f32
      res   : (1, M, Cout) bf16 (identity residual)
      out   : (1, M, Cout)
    src_offsets[i] : static flat-row shifts of source i's conv taps.
    """
    n_src = len(src_offsets)
    src_refs = refs[:n_src]
    pos = n_src
    if has_res:
        res_ref = refs[pos]
        pos += 1
    else:
        res_ref = None
    w_ref, b_ref, o_ref = refs[pos], refs[pos + 1], refs[pos + 2]

    m = o_ref.shape[1]
    acc = None
    row = 0
    for s_ref, offs in zip(src_refs, src_offsets):
        cin = s_ref.shape[-1]
        for off in offs:                       # static Python unroll over taps
            a = s_ref[0, off:off + m, :]                       # (M, Cin) bf16
            d = jnp.dot(a, w_ref[row:row + cin, :],            # bf16 MXU,
                        preferred_element_type=jnp.float32)    # f32 accumulate
            acc = d if acc is None else acc + d
            row += cin

    y = acc + b_ref[...]                                       # BN bias
    if res_ref is not None:
        y = y + res_ref[0].astype(jnp.float32)                 # bf16 residual
    if relu:
        y = jnp.maximum(y, 0.0)
    o_ref[0] = y.astype(o_ref.dtype)


def fused_conv_flat(sources, w, bias, *, out_rows, out_dtype, relu=True,
                    residual=None):
    """One fused conv (+BN bias, +optional residual, +ReLU) pallas_call.

    sources  : list of (flat_src, tap_offsets). flat_src is (N, L, C) bf16.
    w        : (sum_i n_taps_i*C_i, Cout) bf16, rows ordered source-major,
               tap-major, then input channel (matches kernel consumption).
    bias     : (Cout,) f32.
    residual : optional (N, out_rows, Cout) bf16 added in the epilogue.
    Returns (N, out_rows, Cout) in out_dtype (junk right-edge columns included;
    caller slices the valid width back out).
    """
    n = sources[0][0].shape[0]
    cout = w.shape[1]
    assert w.shape[0] == sum(len(offs) * src.shape[-1] for src, offs in sources)

    args, in_specs, src_offsets = [], [], []
    for src, offs in sources:
        args.append(src)
        in_specs.append(pl.BlockSpec((1,) + src.shape[1:], lambda b: (b, 0, 0)))
        src_offsets.append(tuple(int(o) for o in offs))

    has_res = residual is not None
    if has_res:
        args.append(residual)
        in_specs.append(pl.BlockSpec((1,) + residual.shape[1:],
                                     lambda b: (b, 0, 0)))

    # Weights / bias: constant block index -> DMA'd once, resident in VMEM.
    args += [w, bias.astype(jnp.float32).reshape(1, cout)]
    in_specs += [pl.BlockSpec(w.shape, lambda b: (0, 0)),
                 pl.BlockSpec((1, cout), lambda b: (0, 0))]

    kernel = functools.partial(_fused_conv_kernel,
                               src_offsets=tuple(src_offsets),
                               has_res=has_res, relu=relu)
    return pl.pallas_call(
        kernel,
        out_shape=jax.ShapeDtypeStruct((n, out_rows, cout), out_dtype),
        grid_spec=pltpu.PrefetchScalarGridSpec(
            num_scalar_prefetch=0,
            grid=(n,),                                  # one program per image
            in_specs=in_specs,
            out_specs=pl.BlockSpec((1, out_rows, cout), lambda b: (b, 0, 0)),
        ),
        compiler_params=pltpu.CompilerParams(
            dimension_semantics=("parallel",)),
    )(*args)


# ---------------------------------------------------------------------------
# Wrapper-side glue: BN folding, weight layouts, space-to-depth for stride 2
# ---------------------------------------------------------------------------
def fold_bn(gamma, beta, running_mean, running_var, eps=1e-5):
    scale = gamma / jnp.sqrt(running_var + eps)
    return scale, beta - running_mean * scale


def weight_to_matrix(w_oihw):
    """OIHW conv weight -> (kh*kw*Cin, Cout) tap-major (HWIO-flat) matrix."""
    cout, cin, kh, kw = w_oihw.shape
    return jnp.transpose(w_oihw, (2, 3, 1, 0)).reshape(kh * kw * cin, cout)


def space_to_depth2(x_nhwc):
    """(N,H,W,C) -> (N,H/2,W/2,4C), channel order (p*2+q)*C + c (pure permute)."""
    n, h, w, c = x_nhwc.shape
    x = x_nhwc.reshape(n, h // 2, 2, w // 2, 2, c)
    x = jnp.transpose(x, (0, 1, 3, 2, 4, 5))
    return x.reshape(n, h // 2, w // 2, 4 * c)


def s2d_weight_matrix(w_oihw):
    """3x3/stride-2 conv weight -> equivalent 2x2/stride-1 conv over the
    space-to-depth input, as a (4 * 4*Cin, Cout) tap-major matrix."""
    cout, cin, kh, kw = w_oihw.shape
    assert kh == 3 and kw == 3
    w_hwio = jnp.transpose(w_oihw, (2, 3, 1, 0))          # (3,3,Cin,Cout)
    zero = jnp.zeros((cin, cout), w_hwio.dtype)
    taps = []
    for a in range(2):
        for b in range(2):
            blocks = []
            for p in range(2):
                for q in range(2):
                    i, j = 2 * a + p - 1, 2 * b + q - 1   # original tap indices
                    blocks.append(w_hwio[i, j] if (i >= 0 and j >= 0) else zero)
            taps.append(jnp.concatenate(blocks, axis=0))   # (4*Cin, Cout)
    return jnp.concatenate(taps, axis=0)                   # (16*Cin, Cout)


def _flat_taps(padded_w, kh, kw):
    return tuple(i * padded_w + j for i in range(kh) for j in range(kw))


# ---------------------------------------------------------------------------
# BasicBlock forward (two pallas_calls; downsample fused into conv2's matmul)
# ---------------------------------------------------------------------------
def basic_block_forward(x_nchw, p, stride):
    assert stride in (1, 2), "ResNet BasicBlock uses stride 1 or 2"
    x = jnp.transpose(x_nchw, (0, 2, 3, 1))                 # NCHW -> NHWC f32
    n, h, w, cin = x.shape
    planes = p["w1"].shape[0]
    ho, wo = h // stride, w // stride
    xb = x.astype(jnp.bfloat16)                             # bf16 activations

    s1, b1 = fold_bn(p["gamma1"], p["beta1"], p["rm1"], p["rv1"])
    s2, b2 = fold_bn(p["gamma2"], p["beta2"], p["rm2"], p["rv2"])

    # ---- conv1 + bn1 + relu (emitted in bf16) -------------------------------
    if stride == 1:
        wp1 = wo + 2                                        # padded row width
        x1p = jnp.pad(xb, ((0, 0), (1, 2), (1, 1), (0, 0)))  # halo + guard row
        x1f = x1p.reshape(n, -1, cin)
        offs1 = _flat_taps(wp1, 3, 3)
        w1m = weight_to_matrix(p["w1"])
    else:
        # stride-2 3x3 conv == stride-1 2x2 conv over the space-to-depth input
        wp1 = wo + 1
        x2 = space_to_depth2(xb)                            # (n, ho, wo, 4cin)
        x1p = jnp.pad(x2, ((0, 0), (1, 1), (1, 0), (0, 0)))  # top/left halo + guard
        x1f = x1p.reshape(n, -1, 4 * cin)
        offs1 = _flat_taps(wp1, 2, 2)
        w1m = s2d_weight_matrix(p["w1"])
    w1m = (w1m * s1[None, :]).astype(jnp.bfloat16)          # fold BN scale into W
    m1 = ho * wp1
    y1f = fused_conv_flat([(x1f, offs1)], w1m, b1,
                          out_rows=m1, out_dtype=jnp.bfloat16, relu=True)

    # ---- conv2 + bn2 (+ residual) + relu ------------------------------------
    wp2 = wo + 2
    y1 = y1f.reshape(n, ho, wp1, planes)[:, :, :wo, :]      # drop junk columns
    y1pf = jnp.pad(y1, ((0, 0), (1, 2), (1, 1), (0, 0))).reshape(n, -1, planes)
    offs2 = _flat_taps(wp2, 3, 3)
    m2 = ho * wp2
    w2m = (weight_to_matrix(p["w2"]) * s2[None, :]).astype(jnp.bfloat16)

    if stride != 1 or cin != planes:
        # Downsample 1x1 conv fused into the same accumulation as extra K rows.
        sd, bd = fold_bn(p["gamma_d"], p["beta_d"], p["rm_d"], p["rv_d"])
        xe = xb[:, ::stride, ::stride, :]                   # (n, ho, wo, cin)
        xef = jnp.pad(xe, ((0, 0), (0, 0), (0, wp2 - wo), (0, 0))
                      ).reshape(n, -1, cin)
        wdm = (weight_to_matrix(p["wd"]) * sd[None, :]).astype(jnp.bfloat16)
        y2f = fused_conv_flat([(y1pf, offs2), (xef, (0,))],
                              jnp.concatenate([w2m, wdm], axis=0), b2 + bd,
                              out_rows=m2, out_dtype=jnp.float32, relu=True)
    else:
        # Identity residual, streamed in bf16, added in the epilogue.
        resf = jnp.pad(xb, ((0, 0), (0, 0), (0, wp2 - wo), (0, 0))
                       ).reshape(n, -1, cin)
        y2f = fused_conv_flat([(y1pf, offs2)], w2m, b2,
                              out_rows=m2, out_dtype=jnp.float32, relu=True,
                              residual=resf)

    y2 = y2f.reshape(n, ho, wp2, planes)[:, :, :wo, :]
    return jnp.transpose(y2, (0, 3, 1, 2))                  # NHWC -> NCHW


# ---------------------------------------------------------------------------
# Pure-JAX reference (lax.conv, same bf16 operand cast / f32 accumulation)
# ---------------------------------------------------------------------------
def _conv_ref(x_nhwc, w_oihw, stride):
    w_hwio = jnp.transpose(w_oihw, (2, 3, 1, 0)).astype(jnp.bfloat16)
    pad = (w_oihw.shape[2] - 1) // 2
    return lax.conv_general_dilated(
        x_nhwc.astype(jnp.bfloat16), w_hwio, (stride, stride),
        [(pad, pad), (pad, pad)],
        dimension_numbers=("NHWC", "HWIO", "NHWC"),
        preferred_element_type=jnp.float32)


def basic_block_reference(x_nchw, p, stride):
    x = jnp.transpose(x_nchw, (0, 2, 3, 1)).astype(jnp.float32)
    planes = p["w1"].shape[0]
    cin = x.shape[-1]
    if stride != 1 or cin != planes:
        s_d, b_d = fold_bn(p["gamma_d"], p["beta_d"], p["rm_d"], p["rv_d"])
        residual = _conv_ref(x, p["wd"], stride) * s_d + b_d
    else:
        residual = x
    s1, b1 = fold_bn(p["gamma1"], p["beta1"], p["rm1"], p["rv1"])
    y = jnp.maximum(_conv_ref(x, p["w1"], stride) * s1 + b1, 0.0)
    s2, b2 = fold_bn(p["gamma2"], p["beta2"], p["rm2"], p["rv2"])
    y = _conv_ref(y, p["w2"], 1) * s2 + b2 + residual
    y = jnp.maximum(y, 0.0)
    return jnp.transpose(y, (0, 3, 1, 2))


# ---------------------------------------------------------------------------
def init_params(key, in_planes, planes):
    ks = jax.random.split(key, 16)
    f = jnp.float32
    return {
        "w1": 0.1 * jax.random.normal(ks[0], (planes, in_planes, 3, 3), f),
        "gamma1": 1.0 + 0.1 * jax.random.normal(ks[1], (planes,), f),
        "beta1": 0.1 * jax.random.normal(ks[2], (planes,), f),
        "rm1": 0.1 * jax.random.normal(ks[3], (planes,), f),
        "rv1": 1.0 + 0.5 * jax.random.uniform(ks[4], (planes,), f),
        "w2": 0.1 * jax.random.normal(ks[5], (planes, planes, 3, 3), f),
        "gamma2": 1.0 + 0.1 * jax.random.normal(ks[6], (planes,), f),
        "beta2": 0.1 * jax.random.normal(ks[7], (planes,), f),
        "rm2": 0.1 * jax.random.normal(ks[8], (planes,), f),
        "rv2": 1.0 + 0.5 * jax.random.uniform(ks[9], (planes,), f),
        "wd": 0.1 * jax.random.normal(ks[10], (planes, in_planes, 1, 1), f),
        "gamma_d": 1.0 + 0.1 * jax.random.normal(ks[11], (planes,), f),
        "beta_d": 0.1 * jax.random.normal(ks[12], (planes,), f),
        "rm_d": 0.1 * jax.random.normal(ks[13], (planes,), f),
        "rv_d": 1.0 + 0.5 * jax.random.uniform(ks[14], (planes,), f),
    }


if __name__ == "__main__":
    key = jax.random.PRNGKey(0)
    fwd = jax.jit(basic_block_forward, static_argnums=2)
    ref_fn = jax.jit(basic_block_reference, static_argnums=2)
    # First config exercises the fused-downsample (stride-2) path, second the
    # identity-residual (stride-1) path.
    for in_planes, planes, stride in [(4, 8, 2), (8, 8, 1)]:
        key, kx, kp = jax.random.split(key, 3)
        x = jax.random.normal(kx, (2, in_planes, 16, 16), jnp.float32)  # NCHW
        params = init_params(kp, in_planes, planes)

        out = jax.block_until_ready(fwd(x, params, stride))
        ref = jax.block_until_ready(ref_fn(x, params, stride))

        ho = 16 // stride
        assert out.shape == (2, planes, ho, ho), out.shape
        err = float(jnp.max(jnp.abs(out - ref)))
        assert err < 2e-2, f"max abs error {err} (cfg {in_planes},{planes},{stride})"

    print("KERNEL_OK")
</pallas_src>

<mosaic_0001>
module attributes {stable_mosaic.version = 11 : i64} {
  func.func @_fused_conv_kernel(%arg0: i32, %arg1: memref<1x90x16xbf16, #tpu.memory_space<vmem>>, %arg2: memref<64x8xbf16, #tpu.memory_space<vmem>>, %arg3: memref<1x8xf32, #tpu.memory_space<vmem>>, %arg4: memref<1x72x8xbf16, #tpu.memory_space<vmem>>) attributes {dimension_semantics = [#tpu.dimension_semantics<parallel>], iteration_bounds = array<i64: 2>, scalar_prefetch = 0 : i64, scratch_operands = 0 : i64, tpu.core_type = #tpu.core_type<tc>, window_params = [{transform_indices = @transform_0, window_bounds = array<i64: 1, 90, 16>}, {pipeline_mode = #tpu.pipeline_mode<synchronous>, transform_indices = @transform_1, window_bounds = array<i64: 64, 8>}, {pipeline_mode = #tpu.pipeline_mode<synchronous>, transform_indices = @transform_2, window_bounds = array<i64: 1, 8>}, {transform_indices = @transform_3, window_bounds = array<i64: 1, 72, 8>}]} {
    %c0 = arith.constant 0 : index
    %c0_0 = arith.constant 0 : index
    %c0_1 = arith.constant 0 : index
    %0 = vector.load %arg1[%c0, %c0_0, %c0_1] : memref<1x90x16xbf16, #tpu.memory_space<vmem>>, vector<1x72x16xbf16>
    %1 = vector.shape_cast %0 : vector<1x72x16xbf16> to vector<72x16xbf16>
    %c0_2 = arith.constant 0 : index
    %c0_3 = arith.constant 0 : index
    %2 = vector.load %arg2[%c0_2, %c0_3] : memref<64x8xbf16, #tpu.memory_space<vmem>>, vector<16x8xbf16>
    %cst = arith.constant dense<0.000000e+00> : vector<72x8xf32>
    %3 = tpu.matmul %1, %2, %cst {dimension_numbers = #tpu.dot_dimension_numbers<[1], [0], [0], [1], [0, 0, 1, 1], [], []>} : vector<72x16xbf16>, vector<16x8xbf16>, vector<72x8xf32> -> vector<72x8xf32>
    %c0_4 = arith.constant 0 : index
    %c1 = arith.constant 1 : index
    %c0_5 = arith.constant 0 : index
    %4 = vector.load %arg1[%c0_4, %c1, %c0_5] : memref<1x90x16xbf16, #tpu.memory_space<vmem>>, vector<1x72x16xbf16>
    %5 = vector.shape_cast %4 : vector<1x72x16xbf16> to vector<72x16xbf16>
    %c16 = arith.constant 16 : index
    %c0_6 = arith.constant 0 : index
    %6 = vector.load %arg2[%c16, %c0_6] : memref<64x8xbf16, #tpu.memory_space<vmem>>, vector<16x8xbf16>
    %cst_7 = arith.constant dense<0.000000e+00> : vector<72x8xf32>
    %7 = tpu.matmul %5, %6, %cst_7 {dimension_numbers = #tpu.dot_dimension_numbers<[1], [0], [0], [1], [0, 0, 1, 1], [], []>} : vector<72x16xbf16>, vector<16x8xbf16>, vector<72x8xf32> -> vector<72x8xf32>
    %8 = arith.addf %3, %7 : vector<72x8xf32>
    %c0_8 = arith.constant 0 : index
    %c9 = arith.constant 9 : index
    %c0_9 = arith.constant 0 : index
    %9 = vector.load %arg1[%c0_8, %c9, %c0_9] : memref<1x90x16xbf16, #tpu.memory_space<vmem>>, vector<1x72x16xbf16>
    %10 = vector.shape_cast %9 : vector<1x72x16xbf16> to vector<72x16xbf16>
    %c32 = arith.constant 32 : index
    %c0_10 = arith.constant 0 : index
    %11 = vector.load %arg2[%c32, %c0_10] : memref<64x8xbf16, #tpu.memory_space<vmem>>, vector<16x8xbf16>
    %cst_11 = arith.constant dense<0.000000e+00> : vector<72x8xf32>
    %12 = tpu.matmul %10, %11, %cst_11 {dimension_numbers = #tpu.dot_dimension_numbers<[1], [0], [0], [1], [0, 0, 1, 1], [], []>} : vector<72x16xbf16>, vector<16x8xbf16>, vector<72x8xf32> -> vector<72x8xf32>
    %13 = arith.addf %8, %12 : vector<72x8xf32>
    %c0_12 = arith.constant 0 : index
    %c10 = arith.constant 10 : index
    %c0_13 = arith.constant 0 : index
    %14 = vector.load %arg1[%c0_12, %c10, %c0_13] : memref<1x90x16xbf16, #tpu.memory_space<vmem>>, vector<1x72x16xbf16>
    %15 = vector.shape_cast %14 : vector<1x72x16xbf16> to vector<72x16xbf16>
    %c48 = arith.constant 48 : index
    %c0_14 = arith.constant 0 : index
    %16 = vector.load %arg2[%c48, %c0_14] : memref<64x8xbf16, #tpu.memory_space<vmem>>, vector<16x8xbf16>
    %cst_15 = arith.constant dense<0.000000e+00> : vector<72x8xf32>
    %17 = tpu.matmul %15, %16, %cst_15 {dimension_numbers = #tpu.dot_dimension_numbers<[1], [0], [0], [1], [0, 0, 1, 1], [], []>} : vector<72x16xbf16>, vector<16x8xbf16>, vector<72x8xf32> -> vector<72x8xf32>
    %18 = arith.addf %13, %17 : vector<72x8xf32>
    %c0_16 = arith.constant 0 : index
    %c0_17 = arith.constant 0 : index
    %19 = vector.load %arg3[%c0_16, %c0_17] : memref<1x8xf32, #tpu.memory_space<vmem>>, vector<1x8xf32>
    %20 = vector.broadcast %19 : vector<1x8xf32> to vector<72x8xf32>
    %21 = arith.addf %18, %20 : vector<72x8xf32>
    %cst_18 = arith.constant 0.000000e+00 : f32
    %22 = vector.broadcast %cst_18 : f32 to vector<72x8xf32>
    %23 = arith.maximumf %21, %22 : vector<72x8xf32>
    %24 = arith.truncf %23 : vector<72x8xf32> to vector<72x8xbf16>
    %c0_19 = arith.constant 0 : index
    %c0_20 = arith.constant 0 : index
    %c0_21 = arith.constant 0 : index
    %25 = vector.load %arg4[%c0_19, %c0_20, %c0_21] : memref<1x72x8xbf16, #tpu.memory_space<vmem>>, vector<1x72x8xbf16>
    %26 = vector.shape_cast %25 : vector<1x72x8xbf16> to vector<72x8xbf16>
    %27 = vector.shape_cast %24 : vector<72x8xbf16> to vector<1x72x8xbf16>
    tpu.vector_store %arg4[%c0_19, %c0_20, %c0_21], %27 {strides = array<i32>} : memref<1x72x8xbf16, #tpu.memory_space<vmem>>, vector<1x72x8xbf16>,
    return
  }
  func.func @transform_0(%arg0: i32) -> (i32, i32, i32) {
    %c0_i32 = arith.constant 0 : i32
    %c0_i32_0 = arith.constant 0 : i32
    %c0_i32_1 = arith.constant 0 : i32
    return %arg0, %c0_i32, %c0_i32_0 : i32, i32, i32
  }
  func.func @transform_1(%arg0: i32) -> (i32, i32) {
    %c0_i32 = arith.constant 0 : i32
    %c0_i32_0 = arith.constant 0 : i32
    %c0_i32_1 = arith.constant 0 : i32
    return %c0_i32, %c0_i32_0 : i32, i32
  }
  func.func @transform_2(%arg0: i32) -> (i32, i32) {
    %c0_i32 = arith.constant 0 : i32
    %c0_i32_0 = arith.constant 0 : i32
    %c0_i32_1 = arith.constant 0 : i32
    return %c0_i32, %c0_i32_0 : i32, i32
  }
  func.func @transform_3(%arg0: i32) -> (i32, i32, i32) {
    %c0_i32 = arith.constant 0 : i32
    %c0_i32_0 = arith.constant 0 : i32
    %c0_i32_1 = arith.constant 0 : i32
    return %arg0, %c0_i32, %c0_i32_0 : i32, i32, i32
  }
}

module attributes {stable_mosaic.version = 11 : i64} {
  func.func @_fused_conv_kernel(%arg0: i32, %arg1: memref<1x110x8xbf16, #tpu.memory_space<vmem>>, %arg2: memref<1x80x4xbf16, #tpu.memory_space<vmem>>, %arg3: memref<76x8xbf16, #tpu.memory_space<vmem>>, %arg4: memref<1x8xf32, #tpu.memory_space<vmem>>, %arg5: memref<1x80x8xf32, #tpu.memory_space<vmem>>) attributes {dimension_semantics = [#tpu.dimension_semantics<parallel>], iteration_bounds = array<i64: 2>, scalar_prefetch = 0 : i64, scratch_operands = 0 : i64, tpu.core_type = #tpu.core_type<tc>, window_params = [{transform_indices = @transform_0, window_bounds = array<i64: 1, 110, 8>}, {transform_indices = @transform_1, window_bounds = array<i64: 1, 80, 4>}, {pipeline_mode = #tpu.pipeline_mode<synchronous>, transform_indices = @transform_2, window_bounds = array<i64: 76, 8>}, {pipeline_mode = #tpu.pipeline_mode<synchronous>, transform_indices = @transform_3, window_bounds = array<i64: 1, 8>}, {transform_indices = @transform_4, window_bounds = array<i64: 1, 80, 8>}]} {
    %c0 = arith.constant 0 : index
    %c0_0 = arith.constant 0 : index
    %c0_1 = arith.constant 0 : index
    %0 = vector.load %arg1[%c0, %c0_0, %c0_1] : memref<1x110x8xbf16, #tpu.memory_space<vmem>>, vector<1x80x8xbf16>
    %1 = vector.shape_cast %0 : vector<1x80x8xbf16> to vector<80x8xbf16>
    %c0_2 = arith.constant 0 : index
    %c0_3 = arith.constant 0 : index
    %2 = vector.load %arg3[%c0_2, %c0_3] : memref<76x8xbf16, #tpu.memory_space<vmem>>, vector<8x8xbf16>
    %cst = arith.constant dense<0.000000e+00> : vector<80x8xf32>
    %3 = tpu.matmul %1, %2, %cst {dimension_numbers = #tpu.dot_dimension_numbers<[1], [0], [0], [1], [0, 0, 1, 1], [], []>} : vector<80x8xbf16>, vector<8x8xbf16>, vector<80x8xf32> -> vector<80x8xf32>
    %c0_4 = arith.constant 0 : index
    %c1 = arith.constant 1 : index
    %c0_5 = arith.constant 0 : index
    %4 = vector.load %arg1[%c0_4, %c1, %c0_5] : memref<1x110x8xbf16, #tpu.memory_space<vmem>>, vector<1x80x8xbf16>
    %5 = vector.shape_cast %4 : vector<1x80x8xbf16> to vector<80x8xbf16>
    %c8 = arith.constant 8 : index
    %c0_6 = arith.constant 0 : index
    %6 = vector.load %arg3[%c8, %c0_6] : memref<76x8xbf16, #tpu.memory_space<vmem>>, vector<8x8xbf16>
    %cst_7 = arith.constant dense<0.000000e+00> : vector<80x8xf32>
    %7 = tpu.matmul %5, %6, %cst_7 {dimension_numbers = #tpu.dot_dimension_numbers<[1], [0], [0], [1], [0, 0, 1, 1], [], []>} : vector<80x8xbf16>, vector<8x8xbf16>, vector<80x8xf32> -> vector<80x8xf32>
    %8 = arith.addf %3, %7 : vector<80x8xf32>
    %c0_8 = arith.constant 0 : index
    %c2 = arith.constant 2 : index
    %c0_9 = arith.constant 0 : index
    %9 = vector.load %arg1[%c0_8, %c2, %c0_9] : memref<1x110x8xbf16, #tpu.memory_space<vmem>>, vector<1x80x8xbf16>
    %10 = vector.shape_cast %9 : vector<1x80x8xbf16> to vector<80x8xbf16>
    %c16 = arith.constant 16 : index
    %c0_10 = arith.constant 0 : index
    %11 = vector.load %arg3[%c16, %c0_10] : memref<76x8xbf16, #tpu.memory_space<vmem>>, vector<8x8xbf16>
    %cst_11 = arith.constant dense<0.000000e+00> : vector<80x8xf32>
    %12 = tpu.matmul %10, %11, %cst_11 {dimension_numbers = #tpu.dot_dimension_numbers<[1], [0], [0], [1], [0, 0, 1, 1], [], []>} : vector<80x8xbf16>, vector<8x8xbf16>, vector<80x8xf32> -> vector<80x8xf32>
    %13 = arith.addf %8, %12 : vector<80x8xf32>
    %c0_12 = arith.constant 0 : index
    %c10 = arith.constant 10 : index
    %c0_13 = arith.constant 0 : index
    %14 = vector.load %arg1[%c0_12, %c10, %c0_13] : memref<1x110x8xbf16, #tpu.memory_space<vmem>>, vector<1x80x8xbf16>
    %15 = vector.shape_cast %14 : vector<1x80x8xbf16> to vector<80x8xbf16>
    %c24 = arith.constant 24 : index
    %c0_14 = arith.constant 0 : index
    %16 = vector.load %arg3[%c24, %c0_14] : memref<76x8xbf16, #tpu.memory_space<vmem>>, vector<8x8xbf16>
    %cst_15 = arith.constant dense<0.000000e+00> : vector<80x8xf32>
    %17 = tpu.matmul %15, %16, %cst_15 {dimension_numbers = #tpu.dot_dimension_numbers<[1], [0], [0], [1], [0, 0, 1, 1], [], []>} : vector<80x8xbf16>, vector<8x8xbf16>, vector<80x8xf32> -> vector<80x8xf32>
    %18 = arith.addf %13, %17 : vector<80x8xf32>
    %c0_16 = arith.constant 0 : index
    %c11 = arith.constant 11 : index
    %c0_17 = arith.constant 0 : index
    %19 = vector.load %arg1[%c0_16, %c11, %c0_17] : memref<1x110x8xbf16, #tpu.memory_space<vmem>>, vector<1x80x8xbf16>
    %20 = vector.shape_cast %19 : vector<1x80x8xbf16> to vector<80x8xbf16>
    %c32 = arith.constant 32 : index
    %c0_18 = arith.constant 0 : index
    %21 = vector.load %arg3[%c32, %c0_18] : memref<76x8xbf16, #tpu.memory_space<vmem>>, vector<8x8xbf16>
    %cst_19 = arith.constant dense<0.000000e+00> : vector<80x8xf32>
    %22 = tpu.matmul %20, %21, %cst_19 {dimension_numbers = #tpu.dot_dimension_numbers<[1], [0], [0], [1], [0, 0, 1, 1], [], []>} : vector<80x8xbf16>, vector<8x8xbf16>, vector<80x8xf32> -> vector<80x8xf32>
    %23 = arith.addf %18, %22 : vector<80x8xf32>
    %c0_20 = arith.constant 0 : index
    %c12 = arith.constant 12 : index
    %c0_21 = arith.constant 0 : index
    %24 = vector.load %arg1[%c0_20, %c12, %c0_21] : memref<1x110x8xbf16, #tpu.memory_space<vmem>>, vector<1x80x8xbf16>
    %25 = vector.shape_cast %24 : vector<1x80x8xbf16> to vector<80x8xbf16>
    %c40 = arith.constant 40 : index
    %c0_22 = arith.constant 0 : index
    %26 = vector.load %arg3[%c40, %c0_22] : memref<76x8xbf16, #tpu.memory_space<vmem>>, vector<8x8xbf16>
    %cst_23 = arith.constant dense<0.000000e+00> : vector<80x8xf32>
    %27 = tpu.matmul %25, %26, %cst_23 {dimension_numbers = #tpu.dot_dimension_numbers<[1], [0], [0], [1], [0, 0, 1, 1], [], []>} : vector<80x8xbf16>, vector<8x8xbf16>, vector<80x8xf32> -> vector<80x8xf32>
    %28 = arith.addf %23, %27 : vector<80x8xf32>
    %c0_24 = arith.constant 0 : index
    %c20 = arith.constant 20 : index
    %c0_25 = arith.constant 0 : index
    %29 = vector.load %arg1[%c0_24, %c20, %c0_25] : memref<1x110x8xbf16, #tpu.memory_space<vmem>>, vector<1x80x8xbf16>
    %30 = vector.shape_cast %29 : vector<1x80x8xbf16> to vector<80x8xbf16>
    %c48 = arith.constant 48 : index
    %c0_26 = arith.constant 0 : index
    %31 = vector.load %arg3[%c48, %c0_26] : memref<76x8xbf16, #tpu.memory_space<vmem>>, vector<8x8xbf16>
    %cst_27 = arith.constant dense<0.000000e+00> : vector<80x8xf32>
    %32 = tpu.matmul %30, %31, %cst_27 {dimension_numbers = #tpu.dot_dimension_numbers<[1], [0], [0], [1], [0, 0, 1, 1], [], []>} : vector<80x8xbf16>, vector<8x8xbf16>, vector<80x8xf32> -> vector<80x8xf32>
    %33 = arith.addf %28, %32 : vector<80x8xf32>
    %c0_28 = arith.constant 0 : index
    %c21 = arith.constant 21 : index
    %c0_29 = arith.constant 0 : index
    %34 = vector.load %arg1[%c0_28, %c21, %c0_29] : memref<1x110x8xbf16, #tpu.memory_space<vmem>>, vector<1x80x8xbf16>
    %35 = vector.shape_cast %34 : vector<1x80x8xbf16> to vector<80x8xbf16>
    %c56 = arith.constant 56 : index
    %c0_30 = arith.constant 0 : index
    %36 = vector.load %arg3[%c56, %c0_30] : memref<76x8xbf16, #tpu.memory_space<vmem>>, vector<8x8xbf16>
    %cst_31 = arith.constant dense<0.000000e+00> : vector<80x8xf32>
    %37 = tpu.matmul %35, %36, %cst_31 {dimension_numbers = #tpu.dot_dimension_numbers<[1], [0], [0], [1], [0, 0, 1, 1], [], []>} : vector<80x8xbf16>, vector<8x8xbf16>, vector<80x8xf32> -> vector<80x8xf32>
    %38 = arith.addf %33, %37 : vector<80x8xf32>
    %c0_32 = arith.constant 0 : index
    %c22 = arith.constant 22 : index
    %c0_33 = arith.constant 0 : index
    %39 = vector.load %arg1[%c0_32, %c22, %c0_33] : memref<1x110x8xbf16, #tpu.memory_space<vmem>>, vector<1x80x8xbf16>
    %40 = vector.shape_cast %39 : vector<1x80x8xbf16> to vector<80x8xbf16>
    %c64 = arith.constant 64 : index
    %c0_34 = arith.constant 0 : index
    %41 = vector.load %arg3[%c64, %c0_34] : memref<76x8xbf16, #tpu.memory_space<vmem>>, vector<8x8xbf16>
    %cst_35 = arith.constant dense<0.000000e+00> : vector<80x8xf32>
    %42 = tpu.matmul %40, %41, %cst_35 {dimension_numbers = #tpu.dot_dimension_numbers<[1], [0], [0], [1], [0, 0, 1, 1], [], []>} : vector<80x8xbf16>, vector<8x8xbf16>, vector<80x8xf32> -> vector<80x8xf32>
    %43 = arith.addf %38, %42 : vector<80x8xf32>
    %c0_36 = arith.constant 0 : index
    %c0_37 = arith.constant 0 : index
    %c0_38 = arith.constant 0 : index
    %44 = vector.load %arg2[%c0_36, %c0_37, %c0_38] : memref<1x80x4xbf16, #tpu.memory_space<vmem>>, vector<1x80x4xbf16>
    %45 = vector.shape_cast %44 : vector<1x80x4xbf16> to vector<80x4xbf16>
    %c72 = arith.constant 72 : index
    %c0_39 = arith.constant 0 : index
    %46 = vector.load %arg3[%c72, %c0_39] : memref<76x8xbf16, #tpu.memory_space<vmem>>, vector<4x8xbf16>
    %cst_40 = arith.constant dense<0.000000e+00> : vector<80x8xf32>
    %47 = tpu.matmul %45, %46, %cst_40 {dimension_numbers = #tpu.dot_dimension_numbers<[1], [0], [0], [1], [0, 0, 1, 1], [], []>} : vector<80x4xbf16>, vector<4x8xbf16>, vector<80x8xf32> -> vector<80x8xf32>
    %48 = arith.addf %43, %47 : vector<80x8xf32>
    %c0_41 = arith.constant 0 : index
    %c0_42 = arith.constant 0 : index
    %49 = vector.load %arg4[%c0_41, %c0_42] : memref<1x8xf32, #tpu.memory_space<vmem>>, vector<1x8xf32>
    %50 = vector.broadcast %49 : vector<1x8xf32> to vector<80x8xf32>
    %51 = arith.addf %48, %50 : vector<80x8xf32>
    %cst_43 = arith.constant 0.000000e+00 : f32
    %52 = vector.broadcast %cst_43 : f32 to vector<80x8xf32>
    %53 = arith.maximumf %51, %52 : vector<80x8xf32>
    %c0_44 = arith.constant 0 : index
    %c0_45 = arith.constant 0 : index
    %c0_46 = arith.constant 0 : index
    %54 = vector.load %arg5[%c0_44, %c0_45, %c0_46] : memref<1x80x8xf32, #tpu.memory_space<vmem>>, vector<1x80x8xf32>
    %55 = vector.shape_cast %54 : vector<1x80x8xf32> to vector<80x8xf32>
    %56 = vector.shape_cast %53 : vector<80x8xf32> to vector<1x80x8xf32>
    tpu.vector_store %arg5[%c0_44, %c0_45, %c0_46], %56 {strides = array<i32>} : memref<1x80x8xf32, #tpu.memory_space<vmem>>, vector<1x80x8xf32>,
    return
  }
  func.func @transform_0(%arg0: i32) -> (i32, i32, i32) {
    %c0_i32 = arith.constant 0 : i32
    %c0_i32_0 = arith.constant 0 : i32
    %c0_i32_1 = arith.constant 0 : i32
    return %arg0, %c0_i32, %c0_i32_0 : i32, i32, i32
  }
  func.func @transform_1(%arg0: i32) -> (i32, i32, i32) {
    %c0_i32 = arith.constant 0 : i32
    %c0_i32_0 = arith.constant 0 : i32
    %c0_i32_1 = arith.constant 0 : i32
    return %arg0, %c0_i32, %c0_i32_0 : i32, i32, i32
  }
  func.func @transform_2(%arg0: i32) -> (i32, i32) {
    %c0_i32 = arith.constant 0 : i32
    %c0_i32_0 = arith.constant 0 : i32
    %c0_i32_1 = arith.constant 0 : i32
    return %c0_i32, %c0_i32_0 : i32, i32
  }
  func.func @transform_3(%arg0: i32) -> (i32, i32) {
    %c0_i32 = arith.constant 0 : i32
    %c0_i32_0 = arith.constant 0 : i32
    %c0_i32_1 = arith.constant 0 : i32
    return %c0_i32, %c0_i32_0 : i32, i32
  }
  func.func @transform_4(%arg0: i32) -> (i32, i32, i32) {
    %c0_i32 = arith.constant 0 : i32
    %c0_i32_0 = arith.constant 0 : i32
    %c0_i32_1 = arith.constant 0 : i32
    return %arg0, %c0_i32, %c0_i32_0 : i32, i32, i32
  }
}

</mosaic_0001>

<bundles_post_ra>
// kernel: basic_block_forward.2
= control target key start
LH: loop header
LB: loop body
LE: loop exit
PB: predicated region body
PF: predicated region fallthrough
CT: control target
= control target key end

     0   :  { %s802_s12 = smov 0   ;;  %s917_s0 = inlined_call_operand.vmem [shape: bf16[2,90,16], index: 0, kind: input, shape index: {}]   ;;  %s918_s1 = inlined_call_operand.vmem [shape: bf16[64,8], index: 1, kind: input, shape index: {}]   ;;  %s919_s2 = inlined_call_operand.vmem [shape: f32[1,8], index: 2, kind: input, shape index: {}]   ;;  %s920_s3 = inlined_call_operand.vmem [shape: bf16[2,72,8], index: 3, kind: output, shape index: {}]  }
   0x1 LB: > { %s671_s13 = sadd.s32 4294967295, %s780_s12   ;;  %p675_p0 = scmp.ge.s32.totalorder %s780_s12, 1  ;;  %s780_s12 = sphi %s802_s12, %s13_s12  }
   0x2   : > { %p137_p1 = scmp.lt.s32.totalorder %s780_s12, 3 }
   0x4   : > { %p138_p2 = pnand %p675_p0, %p137_p1 }
   0x5   : > { %p161_p3 = scmp.lt.s32.totalorder (!%p138_p2), %s671_s13, 1 }
   0x6   : > { %141 = sbr.rel (%p138_p2) target bundleno = 231 (0xe7), region = 32 }
   0xb   : > { %v752_v0 = vld [vmem:[%s918_s1] sm:$0xff]  ;;  %v759_v1 = vld [vmem:[%s918_s1 + $0x18] sm:$0xff]  ;;  %v753_v2 = vld [vmem:[%s918_s1 + $0x8] sm:$0xff]  ;;  %s922_s13 = smov (!%p161_p3, %s671_s13), 1  ;;  %vm257_vm0 = vcmask 130048   ;;  %vm502_vm1 = vcmask 1046528  }
   0xc   : > { %v758_v3 = vld [vmem:[%s918_s1 + $0x10] sm:$0xff]  ;;  %331 = vmatpush.bf16.msra.mxu1 %v752_v0  ;;  %540 = vmatpush.bf16.msra.mxu3 %v759_v1  ;;  %s760_s22 = smul.u32 48, %s922_s13  ;;  %vm211_vm2 = vsmask.f32 7424  ;;  %vm606_vm3 = vcmask 60416  }
   0xd   : > { %280 = vmatpush.bf16.msra.mxu0 %v753_v2  ;;  %461 = vmatpush.bf16.msra.mxu2 %v758_v3  ;;  %s761_s28 = smul.u32 36, %s922_s13 }
   0xe   : > { %s828_s25 = scalar_lea.vmem %s917_s0, %s760_s22 }
   0xf   : > { %v748_v4 = vld [vmem:[%s828_s25] sm:$0xff]  ;;  %v771_v6 = vld [vmem:[%s828_s25 + $0x4] sm:$0xf0]  ;;  %v754_v7 = vld [vmem:[%s828_s25 + $0xc] sm:$0xff]  ;;  %s886_s4 = scalar_lea.vmem %s920_s3, %s761_s28 }
  0x10   : > { %v358_v5 = vld [vmem:[%s828_s25 + $0x4] sm:$0xff]   ;;  %v215_v10 = vshll.u32 %v748_v4, 16  ;;  %707 = vmatmul.msk.bf16.vlgmr.msra.gmra.mxu1 %vm257_vm0, %v748_v4  ;;  %v213_v11 = vshrl.u32 %v748_v4, 16  ;;  %v402_v13 = vshll.u32 %v754_v7, 16  ;;  %v504_v15 = vrot.slane %v754_v7, 1  ;;  %v750_v27 = vld [vmem:[%s828_s25 + $0x10] sm:$0xff] }
  0x11   : > { %v772_v8 = vld [vmem:[%s828_s25 + $0x4] sm:$0xe]  ;;  %v749_v9 = vld [vmem:[%s828_s25 + $0x8] sm:$0xff]  ;;  %v395_v18 = vshrl.u32 %v358_v5, 16  ;;  %v397_v19 = vshll.u32 %v358_v5, 16  ;;  %v755_v29 = vld [vmem:[%s828_s25 + $0x14] sm:$0xff] }
  0x12   : > { %v220_v12 = vshll.u32 %v749_v9, 16  ;;  %v773_v14 = vor.u32 %v772_v8, %v771_v6  ;;  %v217_v16 = vrot.slane %v215_v10, 1  ;;  %v404_v23 = vrot.slane %v402_v13, 1  ;;  %v751_v42 = vld [vmem:[%s828_s25 + $0x18] sm:$0xff]  ;;  %v180_v51 = vld [vmem:[%s828_s25 + $0x20] sm:$0xf] }
  0x13   : > { %v399_v22 = vrot.slane %v397_v19, 1  ;;  %v224_v30 = vshrl.u32 %v749_v9, 16  ;;  %v228_v31 = vshll.u32 %v750_v27, 16  ;;  %v406_v32 = vshrl.u32 %v754_v7, 16  ;;  %v756_v43 = vld [vmem:[%s828_s25 + $0x1c] sm:$0xff] }
  0x14   : > { %v222_v17 = vrot.slane %v220_v12, 1  ;;  %v503_v20 = vrot.slane %v773_v14, 1  ;;  %v218_v21 = vor.u32 %v217_v16, %v213_v11  ;;  %v410_v33 = vshll.u32 %v755_v29, 16  ;;  %v183_v52 = vld [vmem:[%s828_s25 + $0x24] sm:$0x1] }
  0x15   : > { %v400_v26 = vor.u32 %v399_v22, %v395_v18  ;;  %v506_v34 = vrot.slane %v755_v29, 1  ;;  %v230_v36 = vrot.slane %v228_v31, 1  ;;  %v408_v37 = vor.u32 %v406_v32, %v404_v23  ;;  %v726_v61 = vld [vmem:[%s828_s25 + $0x24] sm:$0xf]  ;;  %v757_v62 = vld [vmem:[%s828_s25 + $0x24] sm:$0x10] }
  0x16   : > { %v505_v24 = vsel %vm502_vm1, %v503_v20, %v504_v15  ;;  %v223_v25 = vsel %vm211_vm2, %v218_v21, %v222_v17  ;;  %v226_v35 = vor.u32 %v224_v30, %v222_v17  ;;  %v412_v38 = vrot.slane %v410_v33, 1 }
  0x17   : > { %741 = vmatmul.msk.bf16.vlgmr.msra.gmra.mxu3 %vm257_vm0, %v505_v24  ;;  %698 = vmatmul.msk.bf16.vlgmr.msra.gmra.mxu0 %vm257_vm0, %v223_v25  ;;  %v405_v28 = vsel %vm211_vm2, %v400_v26, %v404_v23  ;;  %v507_v39 = vsel %vm502_vm1, %v504_v15, %v506_v34  ;;  %v232_v44 = vshrl.u32 %v750_v27, 16  ;;  %v236_v45 = vshll.u32 %v751_v42, 16  ;;  %v879_v26 = vld [vmem:[%s919_s2] ss:$0 sm:$0xff] }
  0x18   : > { %732 = vmatmul.msk.bf16.vlgmr.msra.gmra.mxu2 %vm257_vm0, %v405_v28  ;;  %v231_v40 = vsel %vm211_vm2, %v226_v35, %v230_v36  ;;  %v413_v41 = vsel %vm211_vm2, %v408_v37, %v412_v38  ;;  %v414_v46 = vshrl.u32 %v755_v29, 16  ;;  %v418_v47 = vshll.u32 %v756_v43, 16 }
  0x19   : > { %v508_v48 = vrot.slane %v756_v43, 1  ;;  %v234_v49 = vor.u32 %v232_v44, %v230_v36  ;;  %v238_v50 = vrot.slane %v236_v45, 1  ;;  %v204_v57 = vunpack.c.l.b16 %v180_v51 }
  0x1a   : > { %v416_v53 = vor.u32 %v414_v46, %v412_v38  ;;  %v420_v54 = vrot.slane %v418_v47, 1  ;;  %v205_v58 = vunpack.c.l.b16 %v183_v52  ;;  %v727_v63 = vor.u32 %v757_v62, %v726_v61 }
  0x1b   : > { %v509_v55 = vsel %vm502_vm1, %v506_v34, %v508_v48  ;;  %v239_v56 = vsel %vm211_vm2, %v234_v49, %v238_v50  ;;  %v240_v0 = vshrl.u32 %v751_v42, 16  ;;  %v422_v2 = vshrl.u32 %v756_v43, 16 }
  0x1c   : > { %v421_v59 = vsel %vm211_vm2, %v416_v53, %v420_v54  ;;  %v210_v60 = vpack.c.b16 %v205_v58, %v204_v57  ;;  %v426_v3 = vshll.u32 %v727_v63, 16  ;;  %v510_v4 = vrot.slane %v727_v63, 1 }
  0x1d   : > { %v242_v5 = vor.u32 %v240_v0, %v238_v50  ;;  %v424_v7 = vor.u32 %v422_v2, %v420_v54  ;;  %v306_v12 = vpack.c.b16 %v204_v57, %v204_v57  ;;  %v430_v14 = vshrl.u32 %v727_v63, 16 }
  0x1e   : > { %v244_v1 = vshll.u32 %v210_v60, 16  ;;  %v428_v8 = vrot.slane %v426_v3, 1  ;;  %v248_v13 = vshrl.u32 %v210_v60, 16 }
  0x20   : > { %708 = vmatmul.msk.bf16.gmra.mxu1 %vm257_vm0, %v749_v9  ;;  %v246_v6 = vrot.slane %v244_v1, 1  ;;  %v511_v9 = vsel %vm502_vm1, %v508_v48, %v510_v4  ;;  %v429_v11 = vsel %vm211_vm2, %v424_v7, %v428_v8  ;;  %v432_v16 = vor.u32 %v430_v14, %v428_v8 }
  0x22   : > { %v247_v10 = vsel %vm211_vm2, %v242_v5, %v246_v6  ;;  %v250_v15 = vor.u32 %v248_v13, %v246_v6 }
  0x27   : > { %742 = vmatmul.msk.bf16.gmra.mxu3 %vm257_vm0, %v507_v39  ;;  %699 = vmatmul.msk.bf16.gmra.mxu0 %vm257_vm0, %v231_v40 }
  0x28   : > { %733 = vmatmul.msk.bf16.gmra.mxu2 %vm257_vm0, %v413_v41 }
  0x30   : > { %709 = vmatmul.msk.bf16.gmra.mxu1 %vm257_vm0, %v750_v27 }
  0x37   : > { %743 = vmatmul.msk.bf16.gmra.mxu3 %vm257_vm0, %v509_v55  ;;  %700 = vmatmul.msk.bf16.gmra.mxu0 %vm257_vm0, %v239_v56 }
  0x38   : > { %734 = vmatmul.msk.bf16.gmra.mxu2 %vm257_vm0, %v421_v59 }
  0x40   : > { %710 = vmatmul.msk.bf16.gmra.mxu1 %vm257_vm0, %v751_v42 }
  0x47   : > { %744 = vmatmul.msk.bf16.gmra.mxu3 %vm257_vm0, %v511_v9  ;;  %701 = vmatmul.msk.bf16.gmra.mxu0 %vm257_vm0, %v247_v10 }
  0x48   : > { %735 = vmatmul.msk.bf16.gmra.mxu2 %vm257_vm0, %v429_v11 }
  0x50   : > { %711 = vmatmul.msk.bf16.gmra.mxu1 %vm257_vm0, %v306_v12 }
  0x57   : > { %745 = vmatmul.msk.bf16.gmra.mxu3 %vm257_vm0, %v510_v4  ;;  %702 = vmatmul.msk.bf16.gmra.mxu0 %vm257_vm0, %v250_v15 }
  0x58   : > { %736 = vmatmul.msk.bf16.gmra.mxu2 %vm257_vm0, %v432_v16 }
  0x8d   : > { %v333_v17 = vpop.f32.mrf.mxu1 }
  0x94   : > { %v282_v18 = vpop.f32.mrf.mxu0 }
  0x95   : > { %v335_v19 = vpop.f32.mrf.mxu1  ;;  %v334_v20 = vadd.f32 %v333_v17, %v282_v18 }
  0x9a   : > { %v542_v21 = vpop.f32.mrf.mxu3 }
  0x9b   : > { %v463_v23 = vpop.f32.mrf.mxu2 }
  0x9c   : > { %v284_v22 = vpop.f32.mrf.mxu0  ;;  %v487_v25 = vadd.f32 %v463_v23, %v334_v20 }
  0x9d   : > { %v338_v24 = vpop.f32.mrf.mxu1  ;;  %v336_v30 = vadd.f32 %v335_v19, %v284_v22 }
  0x9e   : > { %v566_v27 = vadd.f32 %v542_v21, %v487_v25 }
  0xa0   : > { %v579_v28 = vadd.f32 %v879_v26, %v566_v27 }
  0xa2   : > { %v544_v29 = vpop.f32.mrf.mxu3  ;;  %v588_v31 = vmax.f32 %v579_v28, 0.0 }
  0xa3   : > { %v465_v33 = vpop.f32.mrf.mxu2 }
  0xa4   : > { %v287_v32 = vpop.f32.mrf.mxu0  ;;  %v597_v35 = vpack.c.bf16 %v588_v31, %v588_v31  ;;  %v488_v36 = vadd.f32 %v465_v33, %v336_v30 }
  0xa5   : > { %v340_v34 = vpop.f32.mrf.mxu1  ;;  %v339_v38 = vadd.f32 %v338_v24, %v287_v32 }
  0xa6   : > { %607 = vst.msk [vmem:[%s886_s4] sm:$0xf] %vm606_vm3, %v597_v35  ;;  %v567_v37 = vadd.f32 %v544_v29, %v488_v36 }
  0xa8   : > { %v580_v39 = vadd.f32 %v879_v26, %v567_v37 }
  0xaa   : > { %v547_v40 = vpop.f32.mrf.mxu3  ;;  %v589_v41 = vmax.f32 %v580_v39, 0.0 }
  0xab   : > { %v468_v43 = vpop.f32.mrf.mxu2 }
  0xac   : > { %v289_v42 = vpop.f32.mrf.mxu0  ;;  %v598_v45 = vpack.c.bf16 %v589_v41, %v589_v41  ;;  %v489_v46 = vadd.f32 %v468_v43, %v339_v38 }
  0xad   : > { %v343_v44 = vpop.f32.mrf.mxu1  ;;  %v341_v50 = vadd.f32 %v340_v34, %v289_v42 }
  0xae   : > { %608 = vst.msk [vmem:[%s886_s4 + $0x4] sm:$0xf] %vm606_vm3, %v598_v45  ;;  %v568_v47 = vadd.f32 %v547_v40, %v489_v46 }
  0xb0   : > { %v581_v48 = vadd.f32 %v879_v26, %v568_v47 }
  0xb2   : > { %v549_v49 = vpop.f32.mrf.mxu3  ;;  %v590_v51 = vmax.f32 %v581_v48, 0.0 }
  0xb3   : > { %v470_v53 = vpop.f32.mrf.mxu2 }
  0xb4   : > { %v292_v52 = vpop.f32.mrf.mxu0  ;;  %v599_v55 = vpack.c.bf16 %v590_v51, %v590_v51  ;;  %v490_v56 = vadd.f32 %v470_v53, %v341_v50 }
  0xb5   : > { %v345_v54 = vpop.f32.mrf.mxu1  ;;  %v344_v58 = vadd.f32 %v343_v44, %v292_v52 }
  0xb6   : > { %609 = vst.msk [vmem:[%s886_s4 + $0x8] sm:$0xf] %vm606_vm3, %v599_v55  ;;  %v569_v57 = vadd.f32 %v549_v49, %v490_v56 }
  0xb8   : > { %v582_v59 = vadd.f32 %v879_v26, %v569_v57 }
  0xba   : > { %v552_v60 = vpop.f32.mrf.mxu3  ;;  %v591_v61 = vmax.f32 %v582_v59, 0.0 }
  0xbb   : > { %v473_v63 = vpop.f32.mrf.mxu2 }
  0xbc   : > { %v294_v62 = vpop.f32.mrf.mxu0  ;;  %v600_v1 = vpack.c.bf16 %v591_v61, %v591_v61  ;;  %v491_v2 = vadd.f32 %v473_v63, %v344_v58 }
  0xbd   : > { %v348_v0 = vpop.f32.mrf.mxu1  ;;  %v346_v6 = vadd.f32 %v345_v54, %v294_v62 }
  0xbe   : > { %610 = vst.msk [vmem:[%s886_s4 + $0xc] sm:$0xf] %vm606_vm3, %v600_v1  ;;  %v570_v3 = vadd.f32 %v552_v60, %v491_v2 }
  0xc0   : > { %v583_v4 = vadd.f32 %v879_v26, %v570_v3 }
  0xc2   : > { %v554_v5 = vpop.f32.mrf.mxu3  ;;  %v592_v7 = vmax.f32 %v583_v4, 0.0 }
  0xc3   : > { %v475_v9 = vpop.f32.mrf.mxu2 }
  0xc4   : > { %v297_v8 = vpop.f32.mrf.mxu0  ;;  %v601_v11 = vpack.c.bf16 %v592_v7, %v592_v7  ;;  %v492_v12 = vadd.f32 %v475_v9, %v346_v6 }
  0xc5   : > { %v350_v10 = vpop.f32.mrf.mxu1  ;;  %v349_v14 = vadd.f32 %v348_v0, %v297_v8 }
  0xc6   : > { %611 = vst.msk [vmem:[%s886_s4 + $0x10] sm:$0xf] %vm606_vm3, %v601_v11  ;;  %v571_v13 = vadd.f32 %v554_v5, %v492_v12 }
  0xc8   : > { %v584_v15 = vadd.f32 %v879_v26, %v571_v13 }
  0xca   : > { %v557_v16 = vpop.f32.mrf.mxu3  ;;  %v593_v17 = vmax.f32 %v584_v15, 0.0 }
  0xcb   : > { %v478_v19 = vpop.f32.mrf.mxu2 }
  0xcc   : > { %v299_v18 = vpop.f32.mrf.mxu0  ;;  %v602_v21 = vpack.c.bf16 %v593_v17, %v593_v17  ;;  %v493_v22 = vadd.f32 %v478_v19, %v349_v14 }
  0xcd   : > { %v353_v20 = vpop.f32.mrf.mxu1  ;;  %v351_v27 = vadd.f32 %v350_v10, %v299_v18 }
  0xce   : > { %612 = vst.msk [vmem:[%s886_s4 + $0x14] sm:$0xf] %vm606_vm3, %v602_v21  ;;  %v572_v23 = vadd.f32 %v557_v16, %v493_v22 }
  0xd0   : > { %v585_v24 = vadd.f32 %v879_v26, %v572_v23 }
  0xd2   : > { %v559_v25 = vpop.f32.mrf.mxu3  ;;  %v594_v28 = vmax.f32 %v585_v24, 0.0 }
  0xd3   : > { %v480_v30 = vpop.f32.mrf.mxu2 }
  0xd4   : > { %v302_v29 = vpop.f32.mrf.mxu0  ;;  %v603_v32 = vpack.c.bf16 %v594_v28, %v594_v28  ;;  %v494_v33 = vadd.f32 %v480_v30, %v351_v27 }
  0xd5   : > { %v355_v31 = vpop.f32.mrf.mxu1  ;;  %v354_v35 = vadd.f32 %v353_v20, %v302_v29 }
  0xd6   : > { %613 = vst.msk [vmem:[%s886_s4 + $0x18] sm:$0xf] %vm606_vm3, %v603_v32  ;;  %v573_v34 = vadd.f32 %v559_v25, %v494_v33 }
  0xd8   : > { %v586_v36 = vadd.f32 %v879_v26, %v573_v34 }
  0xda   : > { %v562_v37 = vpop.f32.mrf.mxu3  ;;  %v595_v38 = vmax.f32 %v586_v36, 0.0 }
  0xdb   : > { %v483_v40 = vpop.f32.mrf.mxu2 }
  0xdc   : > { %v304_v39 = vpop.f32.mrf.mxu0  ;;  %v604_v41 = vpack.c.bf16 %v595_v38, %v595_v38  ;;  %v495_v42 = vadd.f32 %v483_v40, %v354_v35 }
  0xde   : > { %614 = vst.msk [vmem:[%s886_s4 + $0x1c] sm:$0xf] %vm606_vm3, %v604_v41  ;;  %v574_v43 = vadd.f32 %v562_v37, %v495_v42 }
  0xe0   : > { %v587_v44 = vadd.f32 %v879_v26, %v574_v43 }
  0xe2   : > { %v564_v45 = vpop.f32.mrf.mxu3  ;;  %v596_v46 = vmax.f32 %v587_v44, 0.0 }
  0xe3   : > { %v485_v47 = vpop.f32.mrf.mxu2 }
  0xe4   : > { %v605_v48 = vpack.c.bf16 %v596_v46, %v596_v46 }
  0xe6   : > { %615 = vst.msk [vmem:[%s886_s4 + $0x20] sm:$0xf] %vm606_vm3, %v605_v48 }
  0xe7 PF: > { %s13_s12 = sadd.s32 1, %s780_s12  }
  0xe8   : > { %p10_p4 = scmp.ge.s32.totalorder %s13_s12, 4  }
  0xea   :  { %12 = sbr.rel (!%p10_p4) target bundleno = 1 (0x1), region = 62 }

// kernel: basic_block_forward.3
= control target key start
LH: loop header
LB: loop body
LE: loop exit
PB: predicated region body
PF: predicated region fallthrough
CT: control target
= control target key end

     0   :  { %s1511_s15 = smov 0   ;;  %s1857_s0 = inlined_call_operand.vmem [shape: bf16[2,110,8], index: 0, kind: input, shape index: {}]   ;;  %s1858_s1 = inlined_call_operand.vmem [shape: bf16[2,80,4], index: 1, kind: input, shape index: {}]   ;;  %s1859_s2 = inlined_call_operand.vmem [shape: bf16[76,8], index: 2, kind: input, shape index: {}]   ;;  %s1860_s3 = inlined_call_operand.vmem [shape: f32[1,8], index: 3, kind: input, shape index: {}]   ;;  %s1861_s4 = inlined_call_operand.vmem [shape: f32[2,80,8], index: 4, kind: output, shape index: {}]  }
   0x1 LB: > { %s1312_s16 = sadd.s32 4294967295, %s1484_s15   ;;  %p1316_p0 = scmp.ge.s32.totalorder %s1484_s15, 1  ;;  %s1484_s15 = sphi %s1511_s15, %s14_s15  }
   0x2   : > { %p172_p1 = scmp.lt.s32.totalorder %s1484_s15, 3 }
   0x4   : > { %p173_p2 = pnand %p1316_p0, %p172_p1 }
   0x5   : > { %p203_p3 = scmp.lt.s32.totalorder (!%p173_p2), %s1312_s16, 1 }
   0x6   : > { %176 = sbr.rel (%p173_p2) target bundleno = 360 (0x168), region = 36 }
   0xb   : > { %v229_v0 = vld [vmem:[%s1859_s2] sm:$0xf]  ;;  %vm321_vm0 = vcmask 1043456   ;;  %v231_v2 = vld [vmem:[%s1859_s2 + $0x4] sm:$0xf]  ;;  %s1863_s16 = smov (!%p203_p3, %s1312_s16), 1 }
   0xc   : > { %v370_v1 = vsel %vm321_vm0, %v229_v0, 0  ;;  %v323_v3 = vsel %vm321_vm0, %v231_v2, 0  ;;  %v599_v4 = vld [vmem:[%s1859_s2 + $0x10] sm:$0xf]  ;;  %v720_v5 = vld [vmem:[%s1859_s2 + $0x14] sm:$0xf] }
   0xd   : > { %379 = vmatpush.bf16.msra.mxu1 %v370_v1  ;;  %1465 = vmatpush.bf16.msra.mxu3 %v370_v1  ;;  %v673_v6 = vsel %vm321_vm0, %v599_v4, 0  ;;  %v752_v7 = vsel %vm321_vm0, %v720_v5, 0  ;;  %v407_v8 = vld [vmem:[%s1859_s2 + $0x8] sm:$0xf]  ;;  %v496_v9 = vld [vmem:[%s1859_s2 + $0xc] sm:$0xf] }
   0xe   : > { %332 = vmatpush.bf16.msra.mxu0 %v323_v3  ;;  %1464 = vmatpush.bf16.msra.mxu2 %v323_v3  ;;  %s1466_s29 = smul.u32 56, %s1863_s16  ;;  %v439_v10 = vsel %vm321_vm0, %v407_v8, 0  ;;  %v552_v11 = vsel %vm321_vm0, %v496_v9, 0  ;;  %vm305_vm1 = vcmask 64512   ;;  %vm260_vm2 = vsmask.f32 7424 }
   0xf   : > { %v809_v33 = vld [vmem:[%s1859_s2 + $0x18] sm:$0xf]  ;;  %v912_v34 = vld [vmem:[%s1859_s2 + $0x1c] sm:$0xf]  ;;  %v1033_v54 = vld [vmem:[%s1859_s2 + $0x20] sm:$0xf] }
  0x10   : > { %s1549_s6 = scalar_lea.vmem %s1857_s0, %s1466_s29  ;;  %v865_v36 = vsel %vm321_vm0, %v809_v33, 0  ;;  %v986_v37 = vsel %vm321_vm0, %v912_v34, 0  ;;  %v1065_v55 = vsel %vm321_vm0, %v1033_v54, 0  ;;  %v1121_v56 = vld [vmem:[%s1859_s2 + $0x24] sm:$0x3]  ;;  %vm1163_vm3 = vcmask 1041408  }
  0x11   : > { %761 = vmatpush.bf16.msrb.mxu1 %v752_v7  ;;  %561 = vmatpush.bf16.msrb.mxu3 %v552_v11  ;;  %v1458_v12 = vld [vmem:[%s1549_s6] sm:$0xff]   ;;  %v1553_v13 = vld [vmem:[%s1549_s6 + $0x8] sm:$0xff]  ;;  %v1556_v14 = vld [vmem:[%s1549_s6 + $0x18] sm:$0xff]  ;;  %v1165_v57 = vsel %vm1163_vm3, %v1121_v56, 0  ;;  %vm411_vm4 = vcmask 1046528   ;;  %vm724_vm5 = vcmask 1045504  }
  0x12   : > { %682 = vmatpush.bf16.msrb.mxu0 %v673_v6  ;;  %448 = vmatpush.bf16.msrb.mxu2 %v439_v10  ;;  %v262_v15 = vshrl.u32 %v1458_v12, 16  ;;  %v264_v16 = vshll.u32 %v1458_v12, 16  ;;  %v1560_v17 = vld [vmem:[%s1549_s6 + $0x20] sm:$0xff]  ;;  %v269_v18 = vshll.u32 %v1553_v13, 16  ;;  %v285_v19 = vshll.u32 %v1556_v14, 16  ;;  %v1574_v32 = vld [vmem:[%s1549_s6 + $0x10] sm:$0xff] }
  0x13   : > { %1341 = vmatmul.msk.bf16.vlgmr.msra.gmra.mxu1 %vm305_vm1, %v1458_v12  ;;  %1344 = vmatmul.msk.bf16.vlgmr.msra.gmra.mxu3 %vm305_vm1, %v1556_v14  ;;  %v289_v20 = vshrl.u32 %v1556_v14, 16  ;;  %v293_v22 = vshll.u32 %v1560_v17, 16  ;;  %v230_v23 = vld [vmem:[%s1549_s6 + $0x28] sm:$0x1]  ;;  %v273_v38 = vshrl.u32 %v1553_v13, 16  ;;  %v277_v39 = vshll.u32 %v1574_v32, 16 }
  0x14   : > { %v266_v21 = vrot.slane %v264_v16, 1  ;;  %v271_v24 = vrot.slane %v269_v18, 1  ;;  %v287_v25 = vrot.slane %v285_v19, 1  ;;  %v253_v29 = vunpack.c.l.b16 %v230_v23  ;;  %v485_v42 = vld [vmem:[%s1549_s6 + $0x4] sm:$0xe]  ;;  %v1592_v43 = vld [vmem:[%s1549_s6 + $0x8] sm:$0xff]  }
  0x15   : > { %v295_v27 = vrot.slane %v293_v22, 1  ;;  %995 = vmatpush.bf16.msra.mxu3 %v986_v37  ;;  %v297_v40 = vshrl.u32 %v1560_v17, 16  ;;  %v279_v45 = vrot.slane %v277_v39, 1  ;;  %v508_v48 = vunpack.c.l.b16 %v485_v42  ;;  %v1602_v52 = vld [vmem:[%s1549_s6 + $0xc] sm:$0xff]  ;;  %v1461_v60 = vld [vmem:[%s1549_s6] sm:$0xf0]  ;;  %1174 = vmatpush.bf16.msra.mxu1 %v1165_v57 }
  0x16   : > { %v267_v26 = vor.u32 %v266_v21, %v262_v15  ;;  %v291_v28 = vor.u32 %v289_v20, %v287_v25  ;;  %v1582_v35 = vpack.c.b16 %v253_v29, %v253_v29  ;;  %v275_v44 = vor.u32 %v273_v38, %v271_v24  ;;  %v1462_v61 = vld [vmem:[%s1549_s6] sm:$0xe]  ;;  %v719_v1 = vld [vmem:[%s1549_s6 + $0x4] sm:$0xc]  ;;  %v1445_v9 = vld [vmem:[%s1549_s6 + $0x14] sm:$0xff]  ;;  %s1467_s17 = smul.u32 40, %s1863_s16 }
  0x17   : > { %v299_v46 = vor.u32 %v297_v40, %v295_v27  ;;  %v509_v49 = vunpack.c.l.b16 %v1592_v43  ;;  %v526_v59 = vrot.slane %v1602_v52, 1  ;;  %v281_v62 = vshrl.u32 %v1574_v32, 16  ;;  %v1446_v33 = vld [vmem:[%s1549_s6 + $0x1c] sm:$0xff]  ;;  %v495_v56 = vld [vmem:[%s1549_s6 + $0x2c] sm:$0x1]  ;;  %s1468_s23 = smul.u32 80, %s1863_s16 }
  0x18   : > { %v272_v30 = vsel %vm260_vm2, %v267_v26, %v271_v24  ;;  %v296_v31 = vsel %vm260_vm2, %v291_v28, %v295_v27  ;;  %v301_v41 = vshll.u32 %v1582_v35, 16  ;;  %v280_v50 = vsel %vm260_vm2, %v275_v44, %v279_v45  ;;  %s1697_s20 = scalar_lea.vmem %s1858_s1, %s1467_s17 }
  0x19   : > { %1336 = vmatmul.msk.bf16.vlgmr.msra.gmra.mxu0 %vm305_vm1, %v272_v30  ;;  %1339 = vmatmul.msk.bf16.vlgmr.msra.gmra.mxu2 %vm305_vm1, %v296_v31  ;;  %v519_v53 = vpack.c.b16 %v509_v49, %v508_v48  ;;  %v1463_v63 = vor.u32 %v1462_v61, %v1461_v60  ;;  %v283_v2 = vor.u32 %v281_v62, %v279_v45  ;;  %v413_v4 = vrot.slane %v1553_v13, 1  ;;  %v798_v60 = vld [vmem:[%s1549_s6 + $0x8] sm:$0xc]  ;;  %s1815_s26 = scalar_lea.vmem %s1861_s4, %s1468_s23 }
  0x1a   : > { %874 = vmatpush.bf16.msra.mxu2 %v865_v36  ;;  %v303_v47 = vrot.slane %v301_v41, 1  ;;  %1074 = vmatpush.bf16.msra.mxu0 %v1065_v55  ;;  %v722_v5 = vunpack.c.l.b16 %v719_v1  ;;  %v613_v12 = vshrl.u32 %v1602_v52, 16  ;;  %v616_v15 = vshll.u32 %v1602_v52, 16 }
  0x1b   : > { %v525_v58 = vrot.slane %v519_v53, 1  ;;  %v412_v3 = vrot.slane %v1463_v63, 1  ;;  %v288_v6 = vsel %vm260_vm2, %v283_v2, %v287_v25  ;;  %v605_v10 = vshrl.u32 %v519_v53, 16 }
  0x1c   : > { %v304_v51 = vsel %vm260_vm2, %v299_v46, %v303_v47  ;;  %v723_v8 = vpack.c.b16 %v509_v49, %v722_v5  ;;  %v608_v11 = vshll.u32 %v519_v53, 16  ;;  %v528_v18 = vrot.slane %v1445_v9, 1  ;;  %v1447_v46 = vld [vmem:[%s1549_s6 + $0x24] sm:$0xff] }
  0x1d   : > { %v527_v0 = vsel %vm411_vm4, %v525_v58, %v526_v59  ;;  %v414_v7 = vsel %vm411_vm4, %v412_v3, %v413_v4  ;;  %v607_v19 = vrot.slane %v605_v10, 1  ;;  %v615_v21 = vrot.slane %v613_v12, 1 }
  0x1e   : > { %v725_v16 = vrot.slane %v723_v8, 2  ;;  %v610_v20 = vrot.slane %v608_v11, 2  ;;  %v618_v22 = vrot.slane %v616_v15, 2  ;;  %v529_v24 = vsel %vm411_vm4, %v526_v59, %v528_v18  ;;  %v1669_v8 = vld [vmem:[%s1549_s6 + $0x10] sm:$0xff] }
  0x1f   : > { %vm603_vm6 = vsmask.f32 6400  ;;  %v415_v27 = vrot.slane %v1574_v32, 1  ;;  %v417_v30 = vrot.slane %v1556_v14, 1  ;;  %v419_v31 = vrot.slane %v1560_v17, 1 }
  0x20   : > { %v611_v25 = vor.u32 %v610_v20, %v607_v19  ;;  %v619_v26 = vor.u32 %v618_v22, %v615_v21  ;;  %v622_v36 = vshrl.u32 %v1445_v9, 16  ;;  %v625_v37 = vshll.u32 %v1445_v9, 16 }
  0x21   : > { %v416_v29 = vsel %vm411_vm4, %v413_v4, %v415_v27  ;;  %v420_v34 = vsel %vm411_vm4, %v417_v30, %v419_v31  ;;  %v728_v38 = vrot.slane %v1445_v9, 2  ;;  %v418_v44 = vsel %vm411_vm4, %v415_v27, %v417_v30 }
  0x22   : > { %v620_v28 = vsel %vm603_vm6, %v611_v25, %v619_v26  ;;  %v624_v39 = vrot.slane %v622_v36, 1  ;;  %v627_v40 = vrot.slane %v625_v37, 2  ;;  %v421_v45 = vrot.slane %v1582_v35, 1 }
  0x23   : > { %1342 = vmatmul.msk.bf16.gmra.mxu1 %vm305_vm1, %v1553_v13  ;;  %1345 = vmatmul.msk.bf16.gmra.mxu3 %vm305_vm1, %v1560_v17  ;;  %v726_v13 = vrot.slane %v1602_v52, 2  ;;  %v631_v48 = vshrl.u32 %v1446_v33, 16  ;;  %v634_v49 = vshll.u32 %v1446_v33, 16  ;;  %v518_v57 = vunpack.c.l.b16 %v495_v56 }
  0x24   : > { %v628_v17 = vor.u32 %v627_v40, %v624_v39  ;;  %v422_v47 = vsel %vm411_vm4, %v419_v31, %v421_v45  ;;  %v640_v61 = vshrl.u32 %v1447_v46, 16  ;;  %v643_v62 = vshll.u32 %v1447_v46, 16  ;;  %v1452_v45 = vld [vmem:[%s1697_s20] sm:$0xff] }
  0x25   : > { %v727_v23 = vsel %vm724_vm5, %v725_v16, %v726_v13  ;;  %v729_v41 = vsel %vm724_vm5, %v726_v13, %v728_v38  ;;  %v633_v52 = vrot.slane %v631_v48, 1  ;;  %v636_v53 = vrot.slane %v634_v49, 2  ;;  %v1702_v49 = vld [vmem:[%s1549_s6 + $0x20] sm:$0xff] }
  0x26   : > { %v629_v42 = vsel %vm603_vm6, %v619_v26, %v628_v17  ;;  %v524_v59 = vpack.c.b16 %v518_v57, %v518_v57  ;;  %v732_v63 = vrot.slane %v1447_v46, 2  ;;  %v821_v1 = vunpack.c.l.b16 %v798_v60 }
  0x27   : > { %v637_v35 = vor.u32 %v636_v53, %v633_v52  ;;  %v822_v2 = vunpack.c.h.b16 %v1592_v43  ;;  %v642_v3 = vrot.slane %v640_v61, 1  ;;  %v645_v4 = vrot.slane %v643_v62, 2 }
  0x28   : > { %v926_v43 = vshrl.u32 %v1669_v8, 16  ;;  %v929_v16 = vshll.u32 %v1669_v8, 16  ;;  %vm916_vm7 = vsmask.f32 5376  ;;  %v839_v37 = vrot.slane %v1669_v8, 2 }
  0x29   : > { %1337 = vmatmul.msk.bf16.gmra.mxu0 %vm305_vm1, %v280_v50  ;;  %1340 = vmatmul.msk.bf16.gmra.mxu2 %vm305_vm1, %v304_v51  ;;  %v730_v50 = vrot.slane %v1446_v33, 2  ;;  %v532_v51 = vrot.slane %v1447_v46, 1  ;;  %v638_v58 = vsel %vm603_vm6, %v628_v17, %v637_v35  ;;  %v832_v9 = vpack.c.b16 %v822_v2, %v821_v1 }
  0x2a   : > { %v646_v10 = vor.u32 %v645_v4, %v642_v3  ;;  %v928_v21 = vrot.slane %v926_v43, 2  ;;  %v931_v22 = vrot.slane %v929_v16, 3  ;;  %vm1147_vm8 = vcmask 31744  }
  0x2b   : > { %v731_v54 = vsel %vm724_vm5, %v728_v38, %v730_v50  ;;  %v733_v5 = vsel %vm724_vm5, %v730_v50, %v732_v63  ;;  %v918_v12 = vshrl.u32 %v832_v9, 16  ;;  %v921_v15 = vshll.u32 %v832_v9, 16 }
  0x2c   : > { %v647_v13 = vsel %vm603_vm6, %v637_v35, %v646_v10  ;;  %v932_v27 = vor.u32 %v931_v22, %v928_v21  ;;  %v838_v36 = vrot.slane %v832_v9, 2  ;;  %vm1037_vm9 = vcmask 1044480  }
  0x2d   : > { %v920_v19 = vrot.slane %v918_v12, 2  ;;  %v923_v20 = vrot.slane %v921_v15, 3  ;;  %v944_v53 = vshrl.u32 %v1702_v49, 16  ;;  %v843_v9 = vrot.slane %v1702_v49, 2 }
  0x2e   : > { %v840_v40 = vsel %vm724_vm5, %v838_v36, %v839_v37 }
  0x2f   : > { %v924_v26 = vor.u32 %v923_v20, %v920_v19  ;;  %v946_v60 = vrot.slane %v944_v53, 2 }
  0x31   : > { %v933_v31 = vsel %vm916_vm7, %v924_v26, %v932_v27 }
  0x33   : > { %1343 = vmatmul.msk.bf16.gmra.mxu1 %vm305_vm1, %v1574_v32  ;;  %1367 = vmatmul.msk.bf16.vlgmr.msrb.gmra.mxu3 %vm305_vm1, %v527_v0  ;;  %v530_v32 = vrot.slane %v1446_v33, 1  ;;  %v534_v0 = vrot.slane %v524_v59, 1  ;;  %v1681_v33 = vld [vmem:[%s1549_s6 + $0x18] sm:$0xff] }
  0x34   : > { %v935_v38 = vshrl.u32 %v1681_v33, 16  ;;  %v841_v52 = vrot.slane %v1681_v33, 2 }
  0x35   : > { %v531_v14 = vsel %vm411_vm4, %v528_v18, %v530_v32  ;;  %v533_v55 = vsel %vm411_vm4, %v530_v32, %v532_v51  ;;  %v938_v32 = vshll.u32 %v1681_v33, 16 }
  0x36   : > { %v842_v59 = vsel %vm724_vm5, %v839_v37, %v841_v52  ;;  %v844_v20 = vsel %vm724_vm5, %v841_v52, %v843_v9  ;;  %v1043_v37 = vrot.slane %v1702_v49, 3 }
  0x37   : > { %v940_v17 = vrot.slane %v938_v32, 3 }
  0x39   : > { %1338 = vmatmul.msk.bf16.gmra.mxu0 %vm305_vm1, %v288_v6  ;;  %1346 = vmatmul.msk.bf16.vlgmr.msrb.gmra.mxu2 %vm305_vm1, %v414_v7  ;;  %v535_v6 = vsel %vm411_vm4, %v532_v51, %v534_v0  ;;  %v598_v7 = vld [vmem:[%s1549_s6 + $0x2c] sm:$0x3]  ;;  %v1039_v51 = vrot.slane %v1669_v8, 3  ;;  %v1041_v8 = vrot.slane %v1681_v33, 3 }
  0x3a   : > { %v601_v11 = vunpack.c.l.b16 %v598_v7  ;;  %v1723_v7 = vld [vmem:[%s1549_s6 + $0x28] sm:$0xff] }
  0x3b   : > { %v1042_v16 = vsel %vm1037_vm9, %v1039_v51, %v1041_v8 }
  0x3c   : > { %v602_v18 = vpack.c.b16 %v601_v11, %v601_v11  ;;  %v956_v11 = vshll.u32 %v1723_v7, 16 }
  0x3e   : > { %v734_v25 = vrot.slane %v602_v18, 2  ;;  %v958_v22 = vrot.slane %v956_v11, 3 }
  0x40   : > { %v735_v30 = vsel %vm724_vm5, %v732_v63, %v734_v25 }
  0x43   : > { %1377 = vmatmul.msk.bf16.vlgmr.msrb.gmra.mxu1 %vm305_vm1, %v727_v23  ;;  %1368 = vmatmul.msk.bf16.gmra.mxu3 %vm305_vm1, %v529_v24  ;;  %v649_v23 = vshrl.u32 %v602_v18, 16  ;;  %v652_v24 = vshll.u32 %v602_v18, 16 }
  0x49   : > { %1372 = vmatmul.msk.bf16.vlgmr.msrb.gmra.mxu0 %vm305_vm1, %v620_v28  ;;  %1347 = vmatmul.msk.bf16.gmra.mxu2 %vm305_vm1, %v416_v29  ;;  %v651_v28 = vrot.slane %v649_v23, 1  ;;  %v654_v29 = vrot.slane %v652_v24, 2  ;;  %v911_v23 = vld [vmem:[%s1549_s6 + $0x30] sm:$0x7] }
  0x4a   : > { %v914_v25 = vunpack.c.l.b16 %v911_v23 }
  0x4c   : > { %v1746_v36 = vpack.c.b16 %v914_v25, %v914_v25 }
  0x4e   : > { %v962_v32 = vshrl.u32 %v1746_v36, 16 }
  0x53   : > { %1378 = vmatmul.msk.bf16.gmra.mxu1 %vm305_vm1, %v729_v41  ;;  %1369 = vmatmul.msk.bf16.gmra.mxu3 %vm305_vm1, %v531_v14  ;;  %v1032_v41 = vld [vmem:[%s1549_s6 + $0x8] sm:$0x8]  ;;  %v937_v14 = vrot.slane %v935_v38, 2  ;;  %v845_v38 = vrot.slane %v1723_v7, 2 }
  0x59   : > { %1373 = vmatmul.msk.bf16.gmra.mxu0 %vm305_vm1, %v629_v42  ;;  %1348 = vmatmul.msk.bf16.gmra.mxu2 %vm305_vm1, %v418_v44  ;;  %v1035_v42 = vunpack.c.l.b16 %v1032_v41  ;;  %v941_v44 = vor.u32 %v940_v17, %v937_v14  ;;  %v1044_v17 = vsel %vm1037_vm9, %v1041_v8, %v1043_v37 }
  0x5b   : > { %v1036_v46 = vpack.c.b16 %v822_v2, %v1035_v42  ;;  %v942_v48 = vsel %vm916_vm7, %v932_v27, %v941_v44  ;;  %v1453_v2 = vld [vmem:[%s1697_s20 + $0x8] sm:$0xff] }
  0x5d   : > { %v1038_v50 = vrot.slane %v1036_v46, 3  ;;  %v846_v46 = vsel %vm724_vm5, %v843_v9, %v845_v38 }
  0x5f   : > { %v1040_v56 = vsel %vm1037_vm9, %v1038_v50, %v1039_v51 }
  0x63   : > { %1379 = vmatmul.msk.bf16.gmra.mxu1 %vm305_vm1, %v731_v54  ;;  %1370 = vmatmul.msk.bf16.gmra.mxu3 %vm305_vm1, %v533_v55  ;;  %v947_v54 = vshll.u32 %v1702_v49, 16  ;;  %v808_v49 = vld [vmem:[%s1549_s6 + $0x30] sm:$0x3] }
  0x64   : > { %v831_v50 = vunpack.c.l.b16 %v808_v49 }
  0x65   : > { %v949_v61 = vrot.slane %v947_v54, 3 }
  0x67   : > { %v950_v62 = vor.u32 %v949_v61, %v946_v60 }
  0x69   : > { %1374 = vmatmul.msk.bf16.gmra.mxu0 %vm305_vm1, %v638_v58  ;;  %1349 = vmatmul.msk.bf16.gmra.mxu2 %vm305_vm1, %v420_v34  ;;  %v655_v34 = vor.u32 %v654_v29, %v651_v28  ;;  %v1454_v29 = vld [vmem:[%s1697_s20 + $0x10] sm:$0xff] }
  0x6b   : > { %v656_v39 = vsel %vm603_vm6, %v646_v10, %v655_v34  ;;  %v953_v10 = vshrl.u32 %v1723_v7, 16 }
  0x6d   : > { %v955_v21 = vrot.slane %v953_v10, 2 }
  0x6f   : > { %v959_v24 = vor.u32 %v958_v22, %v955_v21  ;;  %v1047_v22 = vrot.slane %v1746_v36, 3 }
  0x71   : > { %v960_v34 = vsel %vm916_vm7, %v950_v62, %v959_v24 }
  0x73   : > { %1380 = vmatmul.msk.bf16.gmra.mxu1 %vm305_vm1, %v733_v5  ;;  %1371 = vmatmul.msk.bf16.gmra.mxu3 %vm305_vm1, %v535_v6  ;;  %v951_v6 = vsel %vm916_vm7, %v941_v44, %v950_v62  ;;  %v1045_v62 = vrot.slane %v1723_v7, 3 }
  0x79   : > { %1375 = vmatmul.msk.bf16.gmra.mxu0 %vm305_vm1, %v647_v13  ;;  %1350 = vmatmul.msk.bf16.gmra.mxu2 %vm305_vm1, %v422_v47 }
  0x83   : > { %1381 = vmatmul.msk.bf16.gmra.mxu1 %vm305_vm1, %v735_v30  ;;  %1403 = vmatmul.msk.bf16.vlgmr.msra.gmra.mxu3 %vm305_vm1, %v933_v31 }
  0x89   : > { %1376 = vmatmul.msk.bf16.gmra.mxu0 %vm305_vm1, %v656_v39  ;;  %1398 = vmatmul.msk.bf16.vlgmr.msra.gmra.mxu2 %vm305_vm1, %v840_v40  ;;  %v965_v39 = vshll.u32 %v1746_v36, 16 }
  0x90   : > { %v381_v47 = vpop.f32.mrf.mxu1 }
  0x93   : > { %1433 = vmatmul.msk.bf16.vlgmr.msra.gmra.mxu1 %vm1147_vm8, %v1452_v45  ;;  %1404 = vmatmul.msk.bf16.gmra.mxu3 %vm305_vm1, %v942_v48  ;;  %v967_v48 = vrot.slane %v965_v39, 3 }
  0x96   : > { %v334_v55 = vpop.f32.mrf.mxu0  ;;  %v396_v35 = vpop.f32.mrf.mxu3 }
  0x97   : > { %v1711_v57 = vadd.f32 %v381_v47, %v334_v55  ;;  %v964_v47 = vrot.slane %v962_v32, 2  ;;  %v1455_v55 = vld [vmem:[%s1697_s20 + $0x18] sm:$0xff] }
  0x98   : > { %v383_v58 = vpop.f32.mrf.mxu1 }
  0x99   : > { %1408 = vmatmul.msk.bf16.vlgmr.msra.gmra.mxu0 %vm305_vm1, %v1040_v56  ;;  %1399 = vmatmul.msk.bf16.gmra.mxu2 %vm305_vm1, %v842_v59  ;;  %v968_v51 = vor.u32 %v967_v48, %v964_v47  ;;  %v837_v59 = vpack.c.b16 %v831_v50, %v831_v50 }
  0x9b   : > { %v969_v61 = vsel %vm916_vm7, %v959_v24, %v968_v51 }
  0x9c   : > { %v349_v63 = vpop.f32.mrf.mxu2 }
  0x9d   : > { %v1716_v1 = vadd.f32 %v396_v35, %v349_v63  ;;  %v847_v63 = vrot.slane %v837_v59, 2 }
  0x9e   : > { %v336_v0 = vpop.f32.mrf.mxu0  ;;  %v398_v3 = vpop.f32.mrf.mxu3 }
  0x9f   : > { %v1719_v4 = vadd.f32 %v383_v58, %v336_v0  ;;  %v848_v9 = vsel %vm724_vm5, %v845_v38, %v847_v63 }
  0xa0   : > { %v386_v5 = vpop.f32.mrf.mxu1 }
  0xa3   : > { %1434 = vmatmul.msk.bf16.gmra.mxu1 %vm1147_vm8, %v1453_v2  ;;  %1405 = vmatmul.msk.bf16.gmra.mxu3 %vm305_vm1, %v951_v6 }
  0xa4   : > { %v351_v12 = vpop.f32.mrf.mxu2 }
  0xa5   : > { %v1731_v43 = vadd.f32 %v398_v3, %v351_v12  ;;  %v1046_v3 = vsel %vm1037_vm9, %v1043_v37, %v1045_v62 }
  0xa6   : > { %v339_v15 = vpop.f32.mrf.mxu0  ;;  %v401_v13 = vpop.f32.mrf.mxu3 }
  0xa7   : > { %v1734_v18 = vadd.f32 %v386_v5, %v339_v15 }
  0xa8   : > { %v388_v19 = vpop.f32.mrf.mxu1 }
  0xa9   : > { %1409 = vmatmul.msk.bf16.gmra.mxu0 %vm305_vm1, %v1042_v16  ;;  %1400 = vmatmul.msk.bf16.gmra.mxu2 %vm305_vm1, %v844_v20 }
  0xac   : > { %v354_v26 = vpop.f32.mrf.mxu2 }
  0xad   : > { %v1740_v28 = vadd.f32 %v401_v13, %v354_v26  ;;  %v1048_v26 = vsel %vm1037_vm9, %v1045_v62, %v1047_v22 }
  0xae   : > { %v341_v27 = vpop.f32.mrf.mxu0  ;;  %v403_v30 = vpop.f32.mrf.mxu3 }
  0xaf   : > { %v1743_v31 = vadd.f32 %v388_v19, %v341_v27 }
  0xb0   : > { %v391_v33 = vpop.f32.mrf.mxu1 }
  0xb3   : > { %1435 = vmatmul.msk.bf16.gmra.mxu1 %vm1147_vm8, %v1454_v29  ;;  %1406 = vmatmul.msk.bf16.gmra.mxu3 %vm305_vm1, %v960_v34 }
  0xb4   : > { %v356_v40 = vpop.f32.mrf.mxu2 }
  0xb5   : > { %v1754_v14 = vadd.f32 %v403_v30, %v356_v40 }
  0xb6   : > { %v344_v41 = vpop.f32.mrf.mxu0  ;;  %v563_v42 = vpop.f32.mrf.mxu3 }
  0xb7   : > { %v392_v44 = vadd.f32 %v391_v33, %v344_v41 }
  0xb8   : > { %v393_v45 = vpop.f32.mrf.mxu1 }
  0xb9   : > { %1410 = vmatmul.msk.bf16.gmra.mxu0 %vm305_vm1, %v1044_v17  ;;  %1401 = vmatmul.msk.bf16.gmra.mxu2 %vm305_vm1, %v846_v46 }
  0xbc   : > { %v450_v52 = vpop.f32.mrf.mxu2 }
  0xbd   : > { %v475_v54 = vadd.f32 %v450_v52, %v1711_v57 }
  0xbe   : > { %v346_v53 = vpop.f32.mrf.mxu0  ;;  %v565_v56 = vpop.f32.mrf.mxu3 }
  0xbf   : > { %v394_v35 = vadd.f32 %v393_v45, %v346_v53  ;;  %v588_v60 = vadd.f32 %v563_v42, %v475_v54 }
  0xc0   : > { %v763_v58 = vpop.f32.mrf.mxu1 }
  0xc3   : > { %1436 = vmatmul.msk.bf16.gmra.mxu1 %vm1147_vm8, %v1455_v55  ;;  %1407 = vmatmul.msk.bf16.gmra.mxu3 %vm305_vm1, %v969_v61 }
  0xc4   : > { %v452_v0 = vpop.f32.mrf.mxu2 }
  0xc5   : > { %v476_v2 = vadd.f32 %v452_v0, %v1719_v4  ;;  %v1456_v4 = vld [vmem:[%s1697_s20 + $0x20] sm:$0xff] }
  0xc6   : > { %v684_v57 = vpop.f32.mrf.mxu0  ;;  %v568_v5 = vpop.f32.mrf.mxu3 }
  0xc7   : > { %v709_v6 = vadd.f32 %v684_v57, %v588_v60  ;;  %v589_v10 = vadd.f32 %v565_v56, %v476_v2 }
  0xc8   : > { %v765_v8 = vpop.f32.mrf.mxu1 }
  0xc9   : > { %1411 = vmatmul.msk.bf16.gmra.mxu0 %vm305_vm1, %v1046_v3  ;;  %v1771_v11 = vadd.f32 %v763_v58, %v709_v6  ;;  %1402 = vmatmul.msk.bf16.gmra.mxu2 %vm305_vm1, %v848_v9 }
  0xcc   : > { %v455_v7 = vpop.f32.mrf.mxu2 }
  0xcd   : > { %v477_v12 = vadd.f32 %v455_v7, %v1734_v18 }
  0xce   : > { %v686_v15 = vpop.f32.mrf.mxu0  ;;  %v570_v16 = vpop.f32.mrf.mxu3 }
  0xcf   : > { %v710_v13 = vadd.f32 %v686_v15, %v589_v10  ;;  %v590_v20 = vadd.f32 %v568_v5, %v477_v12 }
  0xd0   : > { %v768_v19 = vpop.f32.mrf.mxu1 }
  0xd1   : > { %v1776_v21 = vadd.f32 %v765_v8, %v710_v13 }
  0xd3   : > { %1437 = vmatmul.msk.bf16.gmra.mxu1 %vm1147_vm8, %v1456_v4 }
  0xd4   : > { %v457_v23 = vpop.f32.mrf.mxu2 }
  0xd5   : > { %v478_v24 = vadd.f32 %v457_v23, %v1743_v31 }
  0xd6   : > { %v689_v25 = vpop.f32.mrf.mxu0  ;;  %v573_v27 = vpop.f32.mrf.mxu3 }
  0xd7   : > { %v711_v18 = vadd.f32 %v689_v25, %v590_v20  ;;  %v591_v30 = vadd.f32 %v570_v16, %v478_v24 }
  0xd8   : > { %v770_v29 = vpop.f32.mrf.mxu1 }
  0xd9   : > { %1412 = vmatmul.msk.bf16.gmra.mxu0 %vm305_vm1, %v1048_v26  ;;  %v1783_v33 = vadd.f32 %v768_v19, %v711_v18 }
  0xdc   : > { %v460_v34 = vpop.f32.mrf.mxu2 }
  0xdd   : > { %v479_v37 = vadd.f32 %v460_v34, %v392_v44 }
  0xde   : > { %v691_v38 = vpop.f32.mrf.mxu0  ;;  %v575_v32 = vpop.f32.mrf.mxu3 }
  0xdf   : > { %v712_v39 = vadd.f32 %v691_v38, %v591_v30  ;;  %v592_v40 = vadd.f32 %v573_v27, %v479_v37  ;;  %v1807_v30 = vld [vmem:[%s1860_s3] ss:$0 sm:$0xff] }
  0xe0   : > { %v773_v36 = vpop.f32.mrf.mxu1 }
  0xe1   : > { %v1785_v41 = vadd.f32 %v770_v29, %v712_v39 }
  0xe4   : > { %v462_v31 = vpop.f32.mrf.mxu2 }
  0xe5   : > { %v480_v17 = vadd.f32 %v462_v31, %v394_v35 }
  0xe6   : > { %v694_v42 = vpop.f32.mrf.mxu0  ;;  %v578_v45 = vpop.f32.mrf.mxu3 }
  0xe7   : > { %v713_v46 = vadd.f32 %v694_v42, %v592_v40  ;;  %v593_v48 = vadd.f32 %v575_v32, %v480_v17 }
  0xe8   : > { %v775_v47 = vpop.f32.mrf.mxu1 }
  0xe9   : > { %v1787_v49 = vadd.f32 %v773_v36, %v713_v46 }
  0xec   : > { %v465_v50 = vpop.f32.mrf.mxu2 }
  0xed   : > { %v481_v51 = vadd.f32 %v465_v50, %v1716_v1 }
  0xee   : > { %v696_v44 = vpop.f32.mrf.mxu0  ;;  %v580_v52 = vpop.f32.mrf.mxu3 }
  0xef   : > { %v714_v53 = vadd.f32 %v696_v44, %v593_v48  ;;  %v594_v55 = vadd.f32 %v578_v45, %v481_v51 }
  0xf0   : > { %v778_v54 = vpop.f32.mrf.mxu1 }
  0xf1   : > { %v1790_v56 = vadd.f32 %v775_v47, %v714_v53 }
  0xf4   : > { %v467_v58 = vpop.f32.mrf.mxu2 }
  0xf5   : > { %v482_v35 = vadd.f32 %v467_v58, %v1731_v43 }
  0xf6   : > { %v699_v59 = vpop.f32.mrf.mxu0  ;;  %v583_v60 = vpop.f32.mrf.mxu3 }
  0xf7   : > { %v715_v61 = vadd.f32 %v699_v59, %v594_v55  ;;  %v595_v63 = vadd.f32 %v580_v52, %v482_v35 }
  0xf8   : > { %v780_v62 = vpop.f32.mrf.mxu1 }
  0xf9   : > { %v1793_v0 = vadd.f32 %v778_v54, %v715_v61 }
  0xfc   : > { %v470_v2 = vpop.f32.mrf.mxu2 }
  0xfd   : > { %v483_v1 = vadd.f32 %v470_v2, %v1740_v28 }
  0xfe   : > { %v701_v57 = vpop.f32.mrf.mxu0  ;;  %v585_v3 = vpop.f32.mrf.mxu3 }
  0xff   : > { %v716_v5 = vadd.f32 %v701_v57, %v595_v63  ;;  %v596_v8 = vadd.f32 %v583_v60, %v483_v1 }
 0x100   : > { %v783_v6 = vpop.f32.mrf.mxu1 }
 0x101   : > { %v1796_v9 = vadd.f32 %v780_v62, %v716_v5 }
 0x104   : > { %v472_v10 = vpop.f32.mrf.mxu2 }
 0x105   : > { %v484_v43 = vadd.f32 %v472_v10, %v1754_v14 }
 0x106   : > { %v704_v7 = vpop.f32.mrf.mxu0  ;;  %v997_v12 = vpop.f32.mrf.mxu3 }
 0x107   : > { %v717_v15 = vadd.f32 %v704_v7, %v596_v8  ;;  %v597_v16 = vadd.f32 %v585_v3, %v484_v43 }
 0x108   : > { %v785_v4 = vpop.f32.mrf.mxu1 }
 0x109   : > { %v1799_v13 = vadd.f32 %v783_v6, %v717_v15 }
 0x10c   : > { %v876_v19 = vpop.f32.mrf.mxu2 }
 0x10d   : > { %v901_v24 = vadd.f32 %v876_v19, %v1771_v11 }
 0x10e   : > { %v706_v28 = vpop.f32.mrf.mxu0  ;;  %v999_v20 = vpop.f32.mrf.mxu3 }
 0x10f   : > { %v718_v22 = vadd.f32 %v706_v28, %v597_v16  ;;  %v1022_v27 = vadd.f32 %v997_v12, %v901_v24 }
 0x110   : > { %v1176_v23 = vpop.f32.mrf.mxu1 }
 0x111   : > { %v1802_v25 = vadd.f32 %v785_v4, %v718_v22 }
 0x114   : > { %v878_v26 = vpop.f32.mrf.mxu2 }
 0x115   : > { %v902_v37 = vadd.f32 %v878_v26, %v1776_v21 }
 0x116   : > { %v1076_v14 = vpop.f32.mrf.mxu0  ;;  %v1002_v18 = vpop.f32.mrf.mxu3 }
 0x117   : > { %v1101_v29 = vadd.f32 %v1076_v14, %v1022_v27  ;;  %v1023_v36 = vadd.f32 %v999_v20, %v902_v37 }
 0x118   : > { %v1178_v34 = vpop.f32.mrf.mxu1 }
 0x119   : > { %v1201_v38 = vadd.f32 %v1176_v23, %v1101_v29 }
 0x11b   : > { %v1215_v32 = vadd.f32 %v1807_v30, %v1201_v38 }
 0x11c   : > { %v881_v39 = vpop.f32.mrf.mxu2 }
 0x11d   : > { %v1225_v11 = vmax.f32 %v1215_v32, 0.0  ;;  %v903_v21 = vadd.f32 %v881_v39, %v1783_v33 }
 0x11e   : > { %v1078_v40 = vpop.f32.mrf.mxu0  ;;  %v1004_v42 = vpop.f32.mrf.mxu3 }
 0x11f   : > { %1235 = vst.msk [vmem:[%s1815_s26] sm:$0xff] %vm305_vm1, %v1225_v11  ;;  %v1102_v31 = vadd.f32 %v1078_v40, %v1023_v36  ;;  %v1024_v50 = vadd.f32 %v1002_v18, %v903_v21 }
 0x120   : > { %v1181_v17 = vpop.f32.mrf.mxu1 }
 0x121   : > { %v1202_v45 = vadd.f32 %v1178_v34, %v1102_v31 }
 0x123   : > { %v1216_v46 = vadd.f32 %v1807_v30, %v1202_v45 }
 0x124   : > { %v883_v48 = vpop.f32.mrf.mxu2 }
 0x125   : > { %v1226_v47 = vmax.f32 %v1216_v46, 0.0  ;;  %v904_v53 = vadd.f32 %v883_v48, %v1785_v41 }
 0x126   : > { %v1081_v51 = vpop.f32.mrf.mxu0  ;;  %v1007_v55 = vpop.f32.mrf.mxu3 }
 0x127   : > { %1236 = vst.msk [vmem:[%s1815_s26 + $0x8] sm:$0xff] %vm305_vm1, %v1226_v47  ;;  %v1103_v44 = vadd.f32 %v1081_v51, %v1024_v50  ;;  %v1025_v59 = vadd.f32 %v1004_v42, %v904_v53 }
 0x128   : > { %v1183_v52 = vpop.f32.mrf.mxu1 }
 0x129   : > { %v1203_v54 = vadd.f32 %v1181_v17, %v1103_v44 }
 0x12b   : > { %v1217_v58 = vadd.f32 %v1807_v30, %v1203_v54 }
 0x12c   : > { %v886_v35 = vpop.f32.mrf.mxu2 }
 0x12d   : > { %v1227_v33 = vmax.f32 %v1217_v58, 0.0  ;;  %v905_v63 = vadd.f32 %v886_v35, %v1787_v49 }
 0x12e   : > { %v1083_v60 = vpop.f32.mrf.mxu0  ;;  %v1009_v57 = vpop.f32.mrf.mxu3 }
 0x12f   : > { %1237 = vst.msk [vmem:[%s1815_s26 + $0x10] sm:$0xff] %vm305_vm1, %v1227_v33  ;;  %v1104_v61 = vadd.f32 %v1083_v60, %v1025_v59  ;;  %v1026_v5 = vadd.f32 %v1007_v55, %v905_v63 }
 0x130   : > { %v1186_v62 = vpop.f32.mrf.mxu1 }
 0x131   : > { %v1204_v2 = vadd.f32 %v1183_v52, %v1104_v61 }
 0x133   : > { %v1218_v1 = vadd.f32 %v1807_v30, %v1204_v2 }
 0x134   : > { %v888_v3 = vpop.f32.mrf.mxu2 }
 0x135   : > { %v1228_v41 = vmax.f32 %v1218_v1, 0.0  ;;  %v906_v43 = vadd.f32 %v888_v3, %v1790_v56 }
 0x136   : > { %v1086_v6 = vpop.f32.mrf.mxu0  ;;  %v1012_v16 = vpop.f32.mrf.mxu3 }
 0x137   : > { %1238 = vst.msk [vmem:[%s1815_s26 + $0x18] sm:$0xff] %vm305_vm1, %v1228_v41  ;;  %v1105_v8 = vadd.f32 %v1086_v6, %v1026_v5  ;;  %v1027_v4 = vadd.f32 %v1009_v57, %v906_v43 }
 0x138   : > { %v1188_v10 = vpop.f32.mrf.mxu1 }
 0x139   : > { %v1205_v7 = vadd.f32 %v1186_v62, %v1105_v8 }
 0x13b   : > { %v1219_v12 = vadd.f32 %v1807_v30, %v1205_v7 }
 0x13c   : > { %v891_v15 = vpop.f32.mrf.mxu2 }
 0x13d   : > { %v1229_v49 = vmax.f32 %v1219_v12, 0.0  ;;  %v907_v20 = vadd.f32 %v891_v15, %v1793_v0 }
 0x13e   : > { %v1088_v19 = vpop.f32.mrf.mxu0  ;;  %v1014_v29 = vpop.f32.mrf.mxu3 }
 0x13f   : > { %1239 = vst.msk [vmem:[%s1815_s26 + $0x20] sm:$0xff] %vm305_vm1, %v1229_v49  ;;  %v1106_v28 = vadd.f32 %v1088_v19, %v1027_v4  ;;  %v1028_v27 = vadd.f32 %v1012_v16, %v907_v20 }
 0x140   : > { %v1191_v23 = vpop.f32.mrf.mxu1 }
 0x141   : > { %v1206_v22 = vadd.f32 %v1188_v10, %v1106_v28 }
 0x143   : > { %v1220_v24 = vadd.f32 %v1807_v30, %v1206_v22 }
 0x144   : > { %v893_v26 = vpop.f32.mrf.mxu2 }
 0x145   : > { %v1230_v56 = vmax.f32 %v1220_v24, 0.0  ;;  %v908_v34 = vadd.f32 %v893_v26, %v1796_v9 }
 0x146   : > { %v1091_v14 = vpop.f32.mrf.mxu0  ;;  %v1017_v42 = vpop.f32.mrf.mxu3 }
 0x147   : > { %1240 = vst.msk [vmem:[%s1815_s26 + $0x28] sm:$0xff] %vm305_vm1, %v1230_v56  ;;  %v1107_v18 = vadd.f32 %v1091_v14, %v1028_v27  ;;  %v1029_v39 = vadd.f32 %v1014_v29, %v908_v34 }
 0x148   : > { %v1193_v32 = vpop.f32.mrf.mxu1 }
 0x149   : > { %v1207_v37 = vadd.f32 %v1191_v23, %v1107_v18 }
 0x14b   : > { %v1221_v38 = vadd.f32 %v1807_v30, %v1207_v37 }
 0x14c   : > { %v896_v11 = vpop.f32.mrf.mxu2 }
 0x14d   : > { %v1231_v0 = vmax.f32 %v1221_v38, 0.0  ;;  %v909_v31 = vadd.f32 %v896_v11, %v1799_v13 }
 0x14e   : > { %v1093_v36 = vpop.f32.mrf.mxu0  ;;  %v1019_v13 = vpop.f32.mrf.mxu3 }
 0x14f   : > { %1241 = vst.msk [vmem:[%s1815_s26 + $0x30] sm:$0xff] %vm305_vm1, %v1231_v0  ;;  %v1108_v40 = vadd.f32 %v1093_v36, %v1029_v39  ;;  %v1030_v46 = vadd.f32 %v1017_v42, %v909_v31 }
 0x150   : > { %v1196_v45 = vpop.f32.mrf.mxu1 }
 0x151   : > { %v1208_v17 = vadd.f32 %v1193_v32, %v1108_v40 }
 0x153   : > { %v1222_v21 = vadd.f32 %v1807_v30, %v1208_v17 }
 0x154   : > { %v898_v47 = vpop.f32.mrf.mxu2 }
 0x155   : > { %v1232_v9 = vmax.f32 %v1222_v21, 0.0  ;;  %v910_v51 = vadd.f32 %v898_v47, %v1802_v25 }
 0x156   : > { %v1096_v48 = vpop.f32.mrf.mxu0 }
 0x157   : > { %1242 = vst.msk [vmem:[%s1815_s26 + $0x38] sm:$0xff] %vm305_vm1, %v1232_v9  ;;  %v1109_v50 = vadd.f32 %v1096_v48, %v1030_v46  ;;  %v1031_v54 = vadd.f32 %v1019_v13, %v910_v51 }
 0x158   : > { %v1198_v33 = vpop.f32.mrf.mxu1 }
 0x159   : > { %v1209_v44 = vadd.f32 %v1196_v45, %v1109_v50 }
 0x15b   : > { %v1223_v52 = vadd.f32 %v1807_v30, %v1209_v44 }
 0x15d   : > { %v1233_v53 = vmax.f32 %v1223_v52, 0.0 }
 0x15e   : > { %v1098_v55 = vpop.f32.mrf.mxu0 }
 0x15f   : > { %1243 = vst.msk [vmem:[%s1815_s26 + $0x40] sm:$0xff] %vm305_vm1, %v1233_v53  ;;  %v1110_v58 = vadd.f32 %v1098_v55, %v1031_v54 }
 0x161   : > { %v1210_v35 = vadd.f32 %v1198_v33, %v1110_v58 }
 0x163   : > { %v1224_v59 = vadd.f32 %v1807_v30, %v1210_v35 }
 0x165   : > { %v1234_v60 = vmax.f32 %v1224_v59, 0.0 }
 0x167   : > { %1244 = vst.msk [vmem:[%s1815_s26 + $0x48] sm:$0xff] %vm305_vm1, %v1234_v60 }
 0x168 PF: > { %s14_s15 = sadd.s32 1, %s1484_s15  }
 0x169   : > { %p11_p4 = scmp.ge.s32.totalorder %s14_s15, 4  }
 0x16b   :  { %13 = sbr.rel (!%p11_p4) target bundleno = 1 (0x1), region = 69 }

</bundles_post_ra>
